<compile_context>
chip_gen: v7x
topology: tpu7x:2x2x1
jax: 0.10.0
libtpu: 0.0.40
codegen_flags: <defaults>
</compile_context>

<pallas_src>
import functools

import jax
import jax.numpy as jnp
from jax.experimental import pallas as pl
from jax.experimental.pallas import tpu as pltpu

NEG_SLOPE = 0.01  # nn.LeakyReLU() default negative_slope
LANE = 128        # TPU lane width


def _round_up(n, m):
    return ((n + m - 1) // m) * m


def _mlp_kernel(x_ref, w1_ref, b1_ref, w2_ref, b2_ref, o_ref):
    # Two MXU matmuls with f32 accumulation + VPU LeakyReLU in f32.
    x = x_ref[...]                                   # (row_tile, d_in_p)   bf16
    h = jnp.dot(x, w1_ref[...], preferred_element_type=jnp.float32)
    h = h + b1_ref[...]                              # bias kept in f32
    h = jnp.where(h > 0, h, NEG_SLOPE * h)           # LeakyReLU (f32 math)
    y = jnp.dot(h.astype(w2_ref.dtype), w2_ref[...],
                preferred_element_type=jnp.float32)
    y = y + b2_ref[...]
    o_ref[...] = y.astype(o_ref.dtype)               # lane-dense store (128-mult)


@functools.partial(jax.jit, static_argnames=("row_tile", "compute_dtype"))
def midi_embedding_forward(x, w1, b1, w2, b2, *, row_tile=1024,
                           compute_dtype=jnp.bfloat16):
    """x: (..., D_in) -> (..., D_out). Matches PyTorch Linear->LeakyReLU->Linear.

    Weights are stored transposed (in, out) so the kernel computes x @ W.
    Rows and feature dims are zero-padded internally; the result is sliced
    back to the caller's shape, so any (batch, seq, d_in) works.
    """
    orig_shape = x.shape
    out_dtype = x.dtype
    d_in = orig_shape[-1]
    hidden = w1.shape[1]
    d_out = w2.shape[1]

    x2d = x.reshape(-1, d_in)
    m = x2d.shape[0]

    # --- pad to lane-dense / tile-aligned shapes (zeros are mathematically inert) ---
    d_in_p = _round_up(d_in, LANE)
    hid_p = _round_up(hidden, LANE)
    d_out_p = _round_up(d_out, LANE)
    m_p = _round_up(max(m, 1), row_tile)

    xp = jnp.zeros((m_p, d_in_p), compute_dtype).at[:m, :d_in].set(
        x2d.astype(compute_dtype))
    w1p = jnp.zeros((d_in_p, hid_p), compute_dtype).at[:d_in, :hidden].set(
        w1.astype(compute_dtype))
    w2p = jnp.zeros((hid_p, d_out_p), compute_dtype).at[:hidden, :d_out].set(
        w2.astype(compute_dtype))
    # biases stay f32 (added onto the f32 accumulator)
    b1p = jnp.zeros((1, hid_p), jnp.float32).at[0, :hidden].set(
        b1.astype(jnp.float32))
    b2p = jnp.zeros((1, d_out_p), jnp.float32).at[0, :d_out].set(
        b2.astype(jnp.float32))

    grid = (m_p // row_tile,)

    itemsize = jnp.dtype(compute_dtype).itemsize
    flops = 2 * m_p * (d_in_p * hid_p + hid_p * d_out_p)
    bytes_accessed = (
        m_p * d_in_p * itemsize                       # stream x
        + d_in_p * hid_p * itemsize                   # W1 (resident)
        + hid_p * d_out_p * itemsize                  # W2 (resident)
        + (hid_p + d_out_p) * 4                       # biases
        + m_p * d_out_p * jnp.dtype(out_dtype).itemsize)  # stream y

    out = pl.pallas_call(
        _mlp_kernel,
        out_shape=jax.ShapeDtypeStruct((m_p, d_out_p), out_dtype),
        grid_spec=pl.GridSpec(
            grid=grid,
            in_specs=[
                pl.BlockSpec((row_tile, d_in_p), lambda i: (i, 0)),  # x row tile
                pl.BlockSpec((d_in_p, hid_p), lambda i: (0, 0)),     # W1 (resident)
                pl.BlockSpec((1, hid_p), lambda i: (0, 0)),          # b1
                pl.BlockSpec((hid_p, d_out_p), lambda i: (0, 0)),    # W2 (resident)
                pl.BlockSpec((1, d_out_p), lambda i: (0, 0)),        # b2
            ],
            out_specs=pl.BlockSpec((row_tile, d_out_p), lambda i: (i, 0)),
        ),
        compiler_params=pltpu.CompilerParams(
            dimension_semantics=("parallel",)),
        cost_estimate=pl.CostEstimate(
            flops=int(flops), transcendentals=0,
            bytes_accessed=int(bytes_accessed)),
    )(xp, w1p, b1p, w2p, b2p)

    return out[:m, :d_out].reshape(*orig_shape[:-1], d_out)


def init_params(key, input_size, hidden_size, embedding_size, dtype=jnp.float32):
    """Deterministic init mimicking nn.Linear's uniform(-1/sqrt(fan_in), 1/sqrt(fan_in)).
    Weights stored transposed (in, out) so the kernel does x @ W."""
    k1, k2, k3, k4 = jax.random.split(key, 4)
    lim1 = 1.0 / (input_size ** 0.5)
    lim2 = 1.0 / (hidden_size ** 0.5)
    w1 = jax.random.uniform(k1, (input_size, hidden_size), dtype, -lim1, lim1)
    b1 = jax.random.uniform(k2, (hidden_size,), dtype, -lim1, lim1)
    w2 = jax.random.uniform(k3, (hidden_size, embedding_size), dtype, -lim2, lim2)
    b2 = jax.random.uniform(k4, (embedding_size,), dtype, -lim2, lim2)
    return w1, b1, w2, b2


if __name__ == "__main__":
    # Small shapes consistent with the module (sizes configurable via params dict).
    batch, seq = 2, 8
    input_size, hidden_size, embedding_size = 16, 32, 32

    key = jax.random.PRNGKey(0)
    kx, kp = jax.random.split(key)
    x = jax.random.normal(kx, (batch, seq, input_size), jnp.float32)
    w1, b1, w2, b2 = init_params(kp, input_size, hidden_size, embedding_size)

    y = midi_embedding_forward(x, w1, b1, w2, b2)
    jax.block_until_ready(y)

    # Reference check in plain JAX (f32). Kernel streams operands in bf16 with
    # f32 accumulation, so compare with a bf16-appropriate tolerance.
    h_ref = x @ w1 + b1
    h_ref = jnp.where(h_ref > 0, h_ref, NEG_SLOPE * h_ref)
    y_ref = h_ref @ w2 + b2
    assert y.shape == (batch, seq, embedding_size)
    assert y.dtype == x.dtype
    assert jnp.allclose(y, y_ref, atol=5e-2, rtol=5e-2)

    print("KERNEL_OK")
</pallas_src>

<mosaic_0001>
module attributes {stable_mosaic.version = 11 : i64} {
  func.func @_mlp_kernel(%arg0: i32, %arg1: memref<1024x128xbf16, #tpu.memory_space<vmem>>, %arg2: memref<128x128xbf16, #tpu.memory_space<vmem>>, %arg3: memref<1x128xf32, #tpu.memory_space<vmem>>, %arg4: memref<128x128xbf16, #tpu.memory_space<vmem>>, %arg5: memref<1x128xf32, #tpu.memory_space<vmem>>, %arg6: memref<1024x128xf32, #tpu.memory_space<vmem>>) attributes {dimension_semantics = [#tpu.dimension_semantics<parallel>], iteration_bounds = array<i64: 1>, scalar_prefetch = 0 : i64, scratch_operands = 0 : i64, tpu.core_type = #tpu.core_type<tc>, window_params = [{transform_indices = @transform_0, window_bounds = array<i64: 1024, 128>}, {pipeline_mode = #tpu.pipeline_mode<synchronous>, transform_indices = @transform_1, window_bounds = array<i64: 128, 128>}, {pipeline_mode = #tpu.pipeline_mode<synchronous>, transform_indices = @transform_2, window_bounds = array<i64: 1, 128>}, {pipeline_mode = #tpu.pipeline_mode<synchronous>, transform_indices = @transform_3, window_bounds = array<i64: 128, 128>}, {pipeline_mode = #tpu.pipeline_mode<synchronous>, transform_indices = @transform_4, window_bounds = array<i64: 1, 128>}, {transform_indices = @transform_5, window_bounds = array<i64: 1024, 128>}]} {
    %c0 = arith.constant 0 : index
    %c0_0 = arith.constant 0 : index
    %0 = vector.load %arg1[%c0, %c0_0] : memref<1024x128xbf16, #tpu.memory_space<vmem>>, vector<1024x128xbf16>
    %c0_1 = arith.constant 0 : index
    %c0_2 = arith.constant 0 : index
    %1 = vector.load %arg2[%c0_1, %c0_2] : memref<128x128xbf16, #tpu.memory_space<vmem>>, vector<128x128xbf16>
    %cst = arith.constant dense<0.000000e+00> : vector<1024x128xf32>
    %2 = tpu.matmul %0, %1, %cst {dimension_numbers = #tpu.dot_dimension_numbers<[1], [0], [0], [1], [0, 0, 1, 1], [], []>} : vector<1024x128xbf16>, vector<128x128xbf16>, vector<1024x128xf32> -> vector<1024x128xf32>
    %c0_3 = arith.constant 0 : index
    %c0_4 = arith.constant 0 : index
    %3 = vector.load %arg3[%c0_3, %c0_4] : memref<1x128xf32, #tpu.memory_space<vmem>>, vector<1x128xf32>
    %4 = vector.broadcast %3 : vector<1x128xf32> to vector<1024x128xf32>
    %5 = arith.addf %2, %4 : vector<1024x128xf32>
    %cst_5 = arith.constant 0.000000e+00 : f32
    %6 = vector.broadcast %cst_5 : f32 to vector<1024x128xf32>
    %7 = arith.cmpf ogt, %5, %6 : vector<1024x128xf32>
    %cst_6 = arith.constant 0.00999999977 : f32
    %8 = vector.broadcast %cst_6 : f32 to vector<1024x128xf32>
    %9 = arith.mulf %8, %5 : vector<1024x128xf32>
    %10 = arith.select %7, %5, %9 : vector<1024x128xi1>, vector<1024x128xf32>
    %11 = arith.truncf %10 : vector<1024x128xf32> to vector<1024x128xbf16>
    %c0_7 = arith.constant 0 : index
    %c0_8 = arith.constant 0 : index
    %12 = vector.load %arg4[%c0_7, %c0_8] : memref<128x128xbf16, #tpu.memory_space<vmem>>, vector<128x128xbf16>
    %cst_9 = arith.constant dense<0.000000e+00> : vector<1024x128xf32>
    %13 = tpu.matmul %11, %12, %cst_9 {dimension_numbers = #tpu.dot_dimension_numbers<[1], [0], [0], [1], [0, 0, 1, 1], [], []>} : vector<1024x128xbf16>, vector<128x128xbf16>, vector<1024x128xf32> -> vector<1024x128xf32>
    %c0_10 = arith.constant 0 : index
    %c0_11 = arith.constant 0 : index
    %14 = vector.load %arg5[%c0_10, %c0_11] : memref<1x128xf32, #tpu.memory_space<vmem>>, vector<1x128xf32>
    %15 = vector.broadcast %14 : vector<1x128xf32> to vector<1024x128xf32>
    %16 = arith.addf %13, %15 : vector<1024x128xf32>
    %c0_12 = arith.constant 0 : index
    %c0_13 = arith.constant 0 : index
    %17 = vector.load %arg6[%c0_12, %c0_13] : memref<1024x128xf32, #tpu.memory_space<vmem>>, vector<1024x128xf32>
    tpu.vector_store %arg6[%c0_12, %c0_13], %16 {strides = array<i32>} : memref<1024x128xf32, #tpu.memory_space<vmem>>, vector<1024x128xf32>,
    return
  }
  func.func @transform_0(%arg0: i32) -> (i32, i32) {
    %c0_i32 = arith.constant 0 : i32
    %c0_i32_0 = arith.constant 0 : i32
    return %arg0, %c0_i32 : i32, i32
  }
  func.func @transform_1(%arg0: i32) -> (i32, i32) {
    %c0_i32 = arith.constant 0 : i32
    %c0_i32_0 = arith.constant 0 : i32
    %c0_i32_1 = arith.constant 0 : i32
    return %c0_i32, %c0_i32_0 : i32, i32
  }
  func.func @transform_2(%arg0: i32) -> (i32, i32) {
    %c0_i32 = arith.constant 0 : i32
    %c0_i32_0 = arith.constant 0 : i32
    %c0_i32_1 = arith.constant 0 : i32
    return %c0_i32, %c0_i32_0 : i32, i32
  }
  func.func @transform_3(%arg0: i32) -> (i32, i32) {
    %c0_i32 = arith.constant 0 : i32
    %c0_i32_0 = arith.constant 0 : i32
    %c0_i32_1 = arith.constant 0 : i32
    return %c0_i32, %c0_i32_0 : i32, i32
  }
  func.func @transform_4(%arg0: i32) -> (i32, i32) {
    %c0_i32 = arith.constant 0 : i32
    %c0_i32_0 = arith.constant 0 : i32
    %c0_i32_1 = arith.constant 0 : i32
    return %c0_i32, %c0_i32_0 : i32, i32
  }
  func.func @transform_5(%arg0: i32) -> (i32, i32) {
    %c0_i32 = arith.constant 0 : i32
    %c0_i32_0 = arith.constant 0 : i32
    return %arg0, %c0_i32 : i32, i32
  }
}

</mosaic_0001>

<bundles_post_ra>
// kernel: midi_embedding_forward.1
= control target key start
LH: loop header
LB: loop body
LE: loop exit
PB: predicated region body
PF: predicated region fallthrough
CT: control target
= control target key end

     0   :  { %s3865_s1 = inlined_call_operand.vmem [shape: bf16[128,128], index: 1, kind: input, shape index: {}]   ;;  %s3866_s0 = inlined_call_operand.vmem [shape: bf16[1024,128], index: 0, kind: input, shape index: {}]   ;;  %s3867_s3 = inlined_call_operand.vmem [shape: bf16[128,128], index: 3, kind: input, shape index: {}]   ;;  %s3868_s2 = inlined_call_operand.vmem [shape: f32[1,128], index: 2, kind: input, shape index: {}]   ;;  %s3869_s4 = inlined_call_operand.vmem [shape: f32[1,128], index: 4, kind: input, shape index: {}]   ;;  %s3870_s5 = inlined_call_operand.vmem [shape: f32[1024,128], index: 5, kind: output, shape index: {}]  }
   0x1   :  { %v2859_v0 = vld [vmem:[%s3865_s1] sm:$0xff]   ;;  %v2860_v1 = vld [vmem:[%s3865_s1 + $0x8] sm:$0xff]   ;;  %v2861_v2 = vld [vmem:[%s3865_s1 + $0x10] sm:$0xff]  }
   0x2   :  { %2571 = vmatprep.subr.bf16.mxu0 %v2859_v0  ;;  %v2862_v3 = vld [vmem:[%s3865_s1 + $0x18] sm:$0xff]   ;;  %v2867_v4 = vld [vmem:[%s3866_s0] sm:$0xff]   ;;  %v2864_v6 = vld [vmem:[%s3865_s1 + $0x28] sm:$0xff]  }
   0x3   :  { %2572 = vmatpush3.bf16.msra.mxu0 %v2859_v0  ;;  %2587 = vmatprep.mubr.bf16.mxu0 %v2867_v4  ;;  %v2863_v5 = vld [vmem:[%s3865_s1 + $0x20] sm:$0xff]   ;;  %v2865_v7 = vld [vmem:[%s3865_s1 + $0x30] sm:$0xff]   ;;  %v2866_v8 = vld [vmem:[%s3865_s1 + $0x38] sm:$0xff]  }
   0x4   :  { %2573 = vmatprep.subr.bf16.mxu0 %v2860_v1  ;;  %v2868_v9 = vld [vmem:[%s3866_s0 + $0x8] sm:$0xff]   ;;  %v2869_v10 = vld [vmem:[%s3866_s0 + $0x10] sm:$0xff]   ;;  %v2870_v11 = vld [vmem:[%s3866_s0 + $0x18] sm:$0xff]  }
   0x5   :  { %v2871_v12 = vld [vmem:[%s3866_s0 + $0x20] sm:$0xff]   ;;  %v2872_v13 = vld [vmem:[%s3866_s0 + $0x28] sm:$0xff]   ;;  %v2873_v14 = vld [vmem:[%s3866_s0 + $0x30] sm:$0xff]  }
   0x6   :  { %v2874_v15 = vld [vmem:[%s3866_s0 + $0x38] sm:$0xff]   ;;  %v2875_v16 = vld [vmem:[%s3866_s0 + $0x40] sm:$0xff]   ;;  %v2876_v17 = vld [vmem:[%s3866_s0 + $0x48] sm:$0xff]  }
   0x7   :  { %2574 = vmatpush3.bf16.msra.mxu0 %v2860_v1  ;;  %v2877_v18 = vld [vmem:[%s3866_s0 + $0x50] sm:$0xff]   ;;  %v2878_v19 = vld [vmem:[%s3866_s0 + $0x58] sm:$0xff]   ;;  %v2879_v20 = vld [vmem:[%s3866_s0 + $0x60] sm:$0xff]  }
   0x8   :  { %2575 = vmatprep.subr.bf16.mxu0 %v2861_v2  ;;  %v2880_v21 = vld [vmem:[%s3866_s0 + $0x68] sm:$0xff]   ;;  %v2881_v22 = vld [vmem:[%s3866_s0 + $0x70] sm:$0xff]   ;;  %v2882_v23 = vld [vmem:[%s3866_s0 + $0x78] sm:$0xff]  }
   0x9   :  { %v2883_v24 = vld [vmem:[%s3866_s0 + $0x80] sm:$0xff]   ;;  %v2884_v25 = vld [vmem:[%s3866_s0 + $0x88] sm:$0xff]   ;;  %v2885_v27 = vld [vmem:[%s3866_s0 + $0x90] sm:$0xff]  }
   0xa   :  { %v2916_v26 = vld [vmem:[%s3867_s3] sm:$0xff]   ;;  %v2918_v28 = vld [vmem:[%s3867_s3 + $0x8] sm:$0xff]   ;;  %v2920_v29 = vld [vmem:[%s3867_s3 + $0x10] sm:$0xff]  }
   0xb   :  { %2576 = vmatpush3.bf16.msra.mxu0 %v2861_v2  ;;  %2715 = vmatprep.subr.bf16.mxu1 %v2916_v26  ;;  %v2886_v30 = vld [vmem:[%s3866_s0 + $0x98] sm:$0xff]   ;;  %v2887_v31 = vld [vmem:[%s3866_s0 + $0xa0] sm:$0xff]   ;;  %v2888_v34 = vld [vmem:[%s3866_s0 + $0xa8] sm:$0xff]  }
   0xc   :  { %2577 = vmatprep.subr.bf16.mxu0 %v2862_v3  ;;  %2716 = vmatpush3.bf16.msra.mxu1 %v2916_v26  ;;  %v2922_v32 = vld [vmem:[%s3867_s3 + $0x18] sm:$0xff]   ;;  %v2924_v33 = vld [vmem:[%s3867_s3 + $0x20] sm:$0xff]   ;;  %v2889_v35 = vld [vmem:[%s3866_s0 + $0xb0] sm:$0xff]  }
   0xd   :  { %2717 = vmatprep.subr.bf16.mxu1 %v2918_v28  ;;  %v2926_v36 = vld [vmem:[%s3867_s3 + $0x28] sm:$0xff]   ;;  %v2890_v37 = vld [vmem:[%s3866_s0 + $0xb8] sm:$0xff]   ;;  %v2891_v38 = vld [vmem:[%s3866_s0 + $0xc0] sm:$0xff]  }
   0xe   :  { %v2928_v39 = vld [vmem:[%s3867_s3 + $0x30] sm:$0xff]   ;;  %v2930_v40 = vld [vmem:[%s3867_s3 + $0x38] sm:$0xff]   ;;  %v2892_v41 = vld [vmem:[%s3866_s0 + $0xc8] sm:$0xff]  }
   0xf   :  { %2578 = vmatpush3.bf16.msra.mxu0 %v2862_v3  ;;  %v2893_v42 = vld [vmem:[%s3866_s0 + $0xd0] sm:$0xff]   ;;  %v2894_v43 = vld [vmem:[%s3866_s0 + $0xd8] sm:$0xff]   ;;  %v2895_v44 = vld [vmem:[%s3866_s0 + $0xe0] sm:$0xff]  }
  0x10   :  { %2579 = vmatprep.subr.bf16.mxu0 %v2863_v5  ;;  %2718 = vmatpush3.bf16.msra.mxu1 %v2918_v28  ;;  %v2896_v45 = vld [vmem:[%s3866_s0 + $0xe8] sm:$0xff]   ;;  %v2897_v46 = vld [vmem:[%s3866_s0 + $0xf0] sm:$0xff]   ;;  %v2898_v47 = vld [vmem:[%s3866_s0 + $0xf8] sm:$0xff]  }
  0x11   :  { %2719 = vmatprep.subr.bf16.mxu1 %v2920_v29  ;;  %v2899_v48 = vld [vmem:[%s3866_s0 + $0x100] sm:$0xff]   ;;  %v2900_v49 = vld [vmem:[%s3866_s0 + $0x108] sm:$0xff]   ;;  %v2901_v50 = vld [vmem:[%s3866_s0 + $0x110] sm:$0xff]  }
  0x12   :  { %v2902_v51 = vld [vmem:[%s3866_s0 + $0x118] sm:$0xff]   ;;  %v2903_v52 = vld [vmem:[%s3866_s0 + $0x120] sm:$0xff]   ;;  %v2904_v53 = vld [vmem:[%s3866_s0 + $0x128] sm:$0xff]  }
  0x13   :  { %2580 = vmatpush3.bf16.msra.mxu0 %v2863_v5  ;;  %v2905_v54 = vld [vmem:[%s3866_s0 + $0x130] sm:$0xff]   ;;  %v2906_v55 = vld [vmem:[%s3866_s0 + $0x138] sm:$0xff]   ;;  %v2907_v56 = vld [vmem:[%s3866_s0 + $0x140] sm:$0xff]  }
  0x14   :  { %2581 = vmatprep.subr.bf16.mxu0 %v2864_v6  ;;  %2720 = vmatpush3.bf16.msra.mxu1 %v2920_v29  ;;  %v2908_v57 = vld [vmem:[%s3866_s0 + $0x148] sm:$0xff]   ;;  %v2909_v58 = vld [vmem:[%s3866_s0 + $0x150] sm:$0xff]   ;;  %v2910_v59 = vld [vmem:[%s3866_s0 + $0x158] sm:$0xff]  }
  0x15   :  { %2721 = vmatprep.subr.bf16.mxu1 %v2922_v32  ;;  %v2911_v60 = vld [vmem:[%s3866_s0 + $0x160] sm:$0xff]   ;;  %v2912_v61 = vld [vmem:[%s3866_s0 + $0x168] sm:$0xff]   ;;  %v2913_v62 = vld [vmem:[%s3866_s0 + $0x170] sm:$0xff]  }
  0x16   :  { %v2914_v63 = vld [vmem:[%s3866_s0 + $0x178] sm:$0xff]   ;;  %v2915_v0 = vld [vmem:[%s3866_s0 + $0x180] sm:$0xff]   ;;  %v2917_v1 = vld [vmem:[%s3866_s0 + $0x188] sm:$0xff]  }
  0x17   :  { %2582 = vmatpush3.bf16.msra.mxu0 %v2864_v6  ;;  %v2919_v2 = vld [vmem:[%s3866_s0 + $0x190] sm:$0xff]   ;;  %v2921_v3 = vld [vmem:[%s3866_s0 + $0x198] sm:$0xff]   ;;  %v2923_v4 = vld [vmem:[%s3866_s0 + $0x1a0] sm:$0xff]  }
  0x18   :  { %2583 = vmatprep.subr.bf16.mxu0 %v2865_v7  ;;  %2722 = vmatpush3.bf16.msra.mxu1 %v2922_v32  ;;  %v2925_v5 = vld [vmem:[%s3866_s0 + $0x1a8] sm:$0xff]   ;;  %v2927_v6 = vld [vmem:[%s3866_s0 + $0x1b0] sm:$0xff]  }
  0x19   :  { %2723 = vmatprep.subr.bf16.mxu1 %v2924_v33 }
  0x1b   :  { %2584 = vmatpush3.bf16.msra.mxu0 %v2865_v7  ;;  %v3186_v7 = vld [vmem:[%s3868_s2] ss:$0 sm:$0xff] }
  0x1c   :  { %2585 = vmatprep.subr.bf16.mxu0 %v2866_v8  ;;  %2724 = vmatpush3.bf16.msra.mxu1 %v2924_v33 }
  0x1d   :  { %2725 = vmatprep.subr.bf16.mxu1 %v2926_v36 }
  0x1f   :  { %2586 = vmatpush3.bf16.msra.mxu0 %v2866_v8 }
  0x20   :  { %2726 = vmatpush3.bf16.msra.mxu1 %v2926_v36 }
  0x21   :  { %2727 = vmatprep.subr.bf16.mxu1 %v2928_v39 }
  0x22   :  { %2588 = vmatmul.mubr.bf16.vlgmr.msra.gmra.mrb[0].mxu0 %v2868_v9 }
  0x23   :  { %2591 = vmatprep.mubr.bf16.mxu0 %v2869_v10 }
  0x24   :  { %2728 = vmatpush3.bf16.msra.mxu1 %v2928_v39 }
  0x25   :  { %2729 = vmatprep.subr.bf16.mxu1 %v2930_v40 }
  0x28   :  { %2730 = vmatpush3.bf16.msra.mxu1 %v2930_v40 }
  0x2a   :  { %2592 = vmatmul.mubr.bf16.gmra.mrb[4].mxu0 %v2870_v11  ;;  %v2929_v11 = vld [vmem:[%s3866_s0 + $0x1b8] sm:$0xff]  }
  0x2b   :  { %2595 = vmatprep.mubr.bf16.mxu0 %v2871_v12 }
  0x32   :  { %2596 = vmatmul.mubr.bf16.gmra.mrb[8].mxu0 %v2872_v13 }
  0x33   :  { %2599 = vmatprep.mubr.bf16.mxu0 %v2873_v14  ;;  %v2931_v14 = vld [vmem:[%s3866_s0 + $0x1c0] sm:$0xff]  }
  0x3a   :  { %2600 = vmatmul.mubr.bf16.gmra.mrb[12].mxu0 %v2874_v15 }
  0x3b   :  { %2603 = vmatprep.mubr.bf16.mxu0 %v2875_v16 }
  0x42   :  { %2604 = vmatmul.mubr.bf16.gmra.mrb[16].mxu0 %v2876_v17 }
  0x43   :  { %2607 = vmatprep.mubr.bf16.mxu0 %v2877_v18 }
  0x4a   :  { %2608 = vmatmul.mubr.bf16.gmra.mrb[20].mxu0 %v2878_v19 }
  0x4b   :  { %2611 = vmatprep.mubr.bf16.mxu0 %v2879_v20 }
  0x52   :  { %2612 = vmatmul.mubr.bf16.gmra.mrb[24].mxu0 %v2880_v21 }
  0x53   :  { %2615 = vmatprep.mubr.bf16.mxu0 %v2881_v22 }
  0x5a   :  { %2616 = vmatmul.mubr.bf16.gmra.mrb[28].mxu0 %v2882_v23 }
  0x5b   :  { %2619 = vmatprep.mubr.bf16.mxu0 %v2883_v24 }
  0x62   :  { %2620 = vmatmul.mubr.bf16.gmra.mrb[32].mxu0 %v2884_v25 }
  0x63   :  { %2623 = vmatprep.mubr.bf16.mxu0 %v2885_v27 }
  0x6a   :  { %2624 = vmatmul.mubr.bf16.gmra.mrb[36].mxu0 %v2886_v30 }
  0x6b   :  { %2627 = vmatprep.mubr.bf16.mxu0 %v2887_v31  ;;  %v2932_v31 = vld [vmem:[%s3866_s0 + $0x1c8] sm:$0xff]  }
  0x72   :  { %2628 = vmatmul.mubr.bf16.gmra.mrb[40].mxu0 %v2888_v34  ;;  %v2933_v34 = vld [vmem:[%s3866_s0 + $0x1d0] sm:$0xff]  }
  0x73   :  { %2631 = vmatprep.mubr.bf16.mxu0 %v2889_v35 }
  0x7a   :  { %2632 = vmatmul.mubr.bf16.gmra.mrb[44].mxu0 %v2890_v37 }
  0x7b   :  { %2635 = vmatprep.mubr.bf16.mxu0 %v2891_v38 }
  0x82   :  { %2636 = vmatmul.mubr.bf16.gmra.mrb[48].mxu0 %v2892_v41 }
  0x83   :  { %2639 = vmatprep.mubr.bf16.mxu0 %v2893_v42 }
  0x8a   :  { %2640 = vmatmul.mubr.bf16.gmra.mrb[52].mxu0 %v2894_v43 }
  0x8b   :  { %2643 = vmatprep.mubr.bf16.mxu0 %v2895_v44 }
  0x92   :  { %2644 = vmatmul.mubr.bf16.gmra.mrb[56].mxu0 %v2896_v45 }
  0x93   :  { %2647 = vmatprep.mubr.bf16.mxu0 %v2897_v46 }
  0x9a   :  { %2648 = vmatmul.mubr.bf16.gmra.mrb[60].mxu0 %v2898_v47 }
  0x9b   :  { %2651 = vmatprep.mubr.bf16.mxu0 %v2899_v48 }
  0xa2   :  { %2652 = vmatmul.mubr.bf16.gmra.mrb[64].mxu0 %v2900_v49 }
  0xa3   :  { %2655 = vmatprep.mubr.bf16.mxu0 %v2901_v50 }
  0xaa   :  { %2656 = vmatmul.mubr.bf16.gmra.mrb[68].mxu0 %v2902_v51  ;;  %v2934_v51 = vld [vmem:[%s3866_s0 + $0x1d8] sm:$0xff]  }
  0xab   :  { %2659 = vmatprep.mubr.bf16.mxu0 %v2903_v52 }
  0xb2   :  { %2660 = vmatmul.mubr.bf16.gmra.mrb[72].mxu0 %v2904_v53 }
  0xb3   :  { %2663 = vmatprep.mubr.bf16.mxu0 %v2905_v54  ;;  %v2935_v54 = vld [vmem:[%s3866_s0 + $0x1e0] sm:$0xff]  }
  0xba   :  { %2664 = vmatmul.mubr.bf16.gmra.mrb[76].mxu0 %v2906_v55 }
  0xbb   :  { %2667 = vmatprep.mubr.bf16.mxu0 %v2907_v56 }
  0xc2   :  { %2668 = vmatmul.mubr.bf16.gmra.mrb[80].mxu0 %v2908_v57 }
  0xc3   :  { %2671 = vmatprep.mubr.bf16.mxu0 %v2909_v58 }
  0xca   :  { %2672 = vmatmul.mubr.bf16.gmra.mrb[84].mxu0 %v2910_v59 }
  0xcb   :  { %2675 = vmatprep.mubr.bf16.mxu0 %v2911_v60 }
  0xd2   :  { %2676 = vmatmul.mubr.bf16.gmra.mrb[88].mxu0 %v2912_v61 }
  0xd3   :  { %2679 = vmatprep.mubr.bf16.mxu0 %v2913_v62 }
  0xda   :  { %2680 = vmatmul.mubr.bf16.gmra.mrb[92].mxu0 %v2914_v63 }
  0xdb   :  { %2683 = vmatprep.mubr.bf16.mxu0 %v2915_v0 }
  0xe2   :  { %2684 = vmatmul.mubr.bf16.gmra.mrb[96].mxu0 %v2917_v1 }
  0xe3   :  { %2687 = vmatprep.mubr.bf16.mxu0 %v2919_v2 }
  0xea   :  { %2688 = vmatmul.mubr.bf16.gmra.mrb[100].mxu0 %v2921_v3 }
  0xeb   :  { %2691 = vmatprep.mubr.bf16.mxu0 %v2923_v4 }
  0xf2   :  { %2692 = vmatmul.mubr.bf16.gmra.mrb[104].mxu0 %v2925_v5 }
  0xf3   :  { %2695 = vmatprep.mubr.bf16.mxu0 %v2927_v6 }
  0xf5   :  { %v2589_v8 = vpop.f32.mrb[0].mxu0 }
  0xf6   :  { %v647_v9 = vadd.f32 %v2589_v8, %v3186_v7  ;;  %v638_v10 = vpop.f32.mrb[1].mxu0  ;;  %v2936_v8 = vld [vmem:[%s3866_s0 + $0x1e8] sm:$0xff]  }
  0xf7   :  { %v639_v12 = vadd.f32 %v3186_v7, %v638_v10  ;;  %v2590_v13 = vpop.f32.mrb[2].mxu0 }
  0xf8   :  { %v1279_v15 = vmul.f32 0.01, %v647_v9  ;;  %v650_v16 = vadd.f32 %v2590_v13, %v3186_v7  ;;  %v641_v17 = vpop.f32.mrb[3].mxu0  ;;  %vm1151_vm0 = vcmp.gt.f32.partialorder %v647_v9, 0.0 }
  0xf9   :  { %v1277_v18 = vmul.f32 0.01, %v639_v12  ;;  %v642_v19 = vadd.f32 %v3186_v7, %v641_v17  ;;  %vm1149_vm2 = vcmp.gt.f32.partialorder %v639_v12, 0.0 }
  0xfa   :  { %vm1152_vm1 = vcmp.gt.f32.partialorder %v650_v16, 0.0  ;;  %v1280_v20 = vmul.f32 0.01, %v650_v16  ;;  %2696 = vmatmul.mubr.bf16.gmra.mrb[108].mxu0 %v2929_v11  ;;  %v1407_v22 = vsel %vm1151_vm0, %v647_v9, %v1279_v15  ;;  %v2937_v11 = vld [vmem:[%s3866_s0 + $0x1f0] sm:$0xff]  }
  0xfb   :  { %v1278_v21 = vmul.f32 0.01, %v642_v19  ;;  %vm1150_vm3 = vcmp.gt.f32.partialorder %v642_v19, 0.0  ;;  %2699 = vmatprep.mubr.bf16.mxu0 %v2931_v14  ;;  %v1405_v25 = vsel %vm1149_vm2, %v639_v12, %v1277_v18 }
  0xfc   :  { %v1408_v23 = vsel %vm1152_vm1, %v650_v16, %v1280_v20 }
  0xfd   :  { %v2593_v24 = vpop.f32.mrb[4].mxu0  ;;  %v1406_v26 = vsel %vm1150_vm3, %v642_v19, %v1278_v21  ;;  %v1534_v27 = vpack.c.bf16 %v1408_v23, %v1407_v22 }
  0xfe   :  { %v663_v28 = vadd.f32 %v2593_v24, %v3186_v7  ;;  %v654_v29 = vpop.f32.mrb[5].mxu0  ;;  %v1533_v30 = vpack.c.bf16 %v1406_v26, %v1405_v25 }
  0xff   :  { %v655_v32 = vadd.f32 %v3186_v7, %v654_v29  ;;  %v2594_v33 = vpop.f32.mrb[6].mxu0 }
 0x100   :  { %v1283_v35 = vmul.f32 0.01, %v663_v28  ;;  %v666_v36 = vadd.f32 %v2594_v33, %v3186_v7  ;;  %v657_v37 = vpop.f32.mrb[7].mxu0  ;;  %2731 = vmatprep.mubr.bf16.mxu1 %v1533_v30  ;;  %vm1155_vm4 = vcmp.gt.f32.partialorder %v663_v28, 0.0 }
 0x101   :  { %v1281_v38 = vmul.f32 0.01, %v655_v32  ;;  %v658_v39 = vadd.f32 %v3186_v7, %v657_v37  ;;  %2732 = vmatmul.mubr.bf16.vlgmr.msra.gmra.mrb[0].mxu1 %v1534_v27  ;;  %vm1153_vm5 = vcmp.gt.f32.partialorder %v655_v32, 0.0 }
 0x102   :  { %vm1156_vm6 = vcmp.gt.f32.partialorder %v666_v36, 0.0  ;;  %v1284_v40 = vmul.f32 0.01, %v666_v36  ;;  %2700 = vmatmul.mubr.bf16.gmra.mrb[112].mxu0 %v2932_v31  ;;  %v1411_v42 = vsel %vm1155_vm4, %v663_v28, %v1283_v35  ;;  %v2938_v28 = vld [vmem:[%s3866_s0 + $0x1f8] sm:$0xff]  }
 0x103   :  { %vm1154_vm7 = vcmp.gt.f32.partialorder %v658_v39, 0.0  ;;  %v1282_v41 = vmul.f32 0.01, %v658_v39  ;;  %2703 = vmatprep.mubr.bf16.mxu0 %v2933_v34  ;;  %v1409_v45 = vsel %vm1153_vm5, %v655_v32, %v1281_v38 }
 0x104   :  { %v1412_v43 = vsel %vm1156_vm6, %v666_v36, %v1284_v40 }
 0x105   :  { %v2597_v44 = vpop.f32.mrb[8].mxu0  ;;  %v1410_v46 = vsel %vm1154_vm7, %v658_v39, %v1282_v41  ;;  %v1536_v47 = vpack.c.bf16 %v1412_v43, %v1411_v42 }
 0x106   :  { %v679_v48 = vadd.f32 %v2597_v44, %v3186_v7  ;;  %v670_v49 = vpop.f32.mrb[9].mxu0  ;;  %v1535_v50 = vpack.c.bf16 %v1410_v46, %v1409_v45 }
 0x107   :  { %v671_v52 = vadd.f32 %v3186_v7, %v670_v49  ;;  %v2598_v53 = vpop.f32.mrb[10].mxu0 }
 0x108   :  { %v1287_v55 = vmul.f32 0.01, %v679_v48  ;;  %v682_v56 = vadd.f32 %v2598_v53, %v3186_v7  ;;  %v673_v57 = vpop.f32.mrb[11].mxu0  ;;  %2735 = vmatprep.mubr.bf16.mxu1 %v1535_v50  ;;  %vm1159_vm8 = vcmp.gt.f32.partialorder %v679_v48, 0.0 }
 0x109   :  { %v1285_v58 = vmul.f32 0.01, %v671_v52  ;;  %v674_v59 = vadd.f32 %v3186_v7, %v673_v57  ;;  %2736 = vmatmul.mubr.bf16.gmra.mrb[4].mxu1 %v1536_v47  ;;  %vm1157_vm9 = vcmp.gt.f32.partialorder %v671_v52, 0.0 }
 0x10a   :  { %vm1160_vm10 = vcmp.gt.f32.partialorder %v682_v56, 0.0  ;;  %v1288_v60 = vmul.f32 0.01, %v682_v56  ;;  %2704 = vmatmul.mubr.bf16.gmra.mrb[116].mxu0 %v2934_v51  ;;  %v1415_v62 = vsel %vm1159_vm8, %v679_v48, %v1287_v55 }
 0x10b   :  { %vm1158_vm11 = vcmp.gt.f32.partialorder %v674_v59, 0.0  ;;  %v1286_v61 = vmul.f32 0.01, %v674_v59  ;;  %2707 = vmatprep.mubr.bf16.mxu0 %v2935_v54  ;;  %v1413_v1 = vsel %vm1157_vm9, %v671_v52, %v1285_v58 }
 0x10c   :  { %v1416_v63 = vsel %vm1160_vm10, %v682_v56, %v1288_v60 }
 0x10d   :  { %v2601_v0 = vpop.f32.mrb[12].mxu0  ;;  %v1414_v2 = vsel %vm1158_vm11, %v674_v59, %v1286_v61  ;;  %v1538_v3 = vpack.c.bf16 %v1416_v63, %v1415_v62 }
 0x10e   :  { %v695_v4 = vadd.f32 %v2601_v0, %v3186_v7  ;;  %v686_v5 = vpop.f32.mrb[13].mxu0  ;;  %v1537_v6 = vpack.c.bf16 %v1414_v2, %v1413_v1 }
 0x10f   :  { %v687_v9 = vadd.f32 %v3186_v7, %v686_v5  ;;  %v2602_v10 = vpop.f32.mrb[14].mxu0 }
 0x110   :  { %v1291_v12 = vmul.f32 0.01, %v695_v4  ;;  %v698_v13 = vadd.f32 %v2602_v10, %v3186_v7  ;;  %v689_v14 = vpop.f32.mrb[15].mxu0  ;;  %2739 = vmatprep.mubr.bf16.mxu1 %v1537_v6  ;;  %vm1163_vm12 = vcmp.gt.f32.partialorder %v695_v4, 0.0 }
 0x111   :  { %v1289_v15 = vmul.f32 0.01, %v687_v9  ;;  %v690_v16 = vadd.f32 %v3186_v7, %v689_v14  ;;  %2740 = vmatmul.mubr.bf16.gmra.mrb[8].mxu1 %v1538_v3  ;;  %vm1161_vm13 = vcmp.gt.f32.partialorder %v687_v9, 0.0 }
 0x112   :  { %vm1164_vm14 = vcmp.gt.f32.partialorder %v698_v13, 0.0  ;;  %v1292_v17 = vmul.f32 0.01, %v698_v13  ;;  %2708 = vmatmul.mubr.bf16.gmra.mrb[120].mxu0 %v2936_v8  ;;  %v1419_v19 = vsel %vm1163_vm12, %v695_v4, %v1291_v12 }
 0x113   :  { %vm1162_vm15 = vcmp.gt.f32.partialorder %v690_v16, 0.0  ;;  %v1290_v18 = vmul.f32 0.01, %v690_v16  ;;  %2711 = vmatprep.mubr.bf16.mxu0 %v2937_v11  ;;  %v1417_v22 = vsel %vm1161_vm13, %v687_v9, %v1289_v15 }
 0x114   :  { %v1420_v20 = vsel %vm1164_vm14, %v698_v13, %v1292_v17 }
 0x115   :  { %v2605_v21 = vpop.f32.mrb[16].mxu0  ;;  %v1418_v23 = vsel %vm1162_vm15, %v690_v16, %v1290_v18  ;;  %v1540_v24 = vpack.c.bf16 %v1420_v20, %v1419_v19 }
 0x116   :  { %v711_v25 = vadd.f32 %v2605_v21, %v3186_v7  ;;  %v702_v26 = vpop.f32.mrb[17].mxu0  ;;  %v1539_v27 = vpack.c.bf16 %v1418_v23, %v1417_v22 }
 0x117   :  { %v703_v29 = vadd.f32 %v3186_v7, %v702_v26  ;;  %v2606_v30 = vpop.f32.mrb[18].mxu0 }
 0x118   :  { %v1295_v31 = vmul.f32 0.01, %v711_v25  ;;  %v714_v32 = vadd.f32 %v2606_v30, %v3186_v7  ;;  %v705_v33 = vpop.f32.mrb[19].mxu0  ;;  %2743 = vmatprep.mubr.bf16.mxu1 %v1539_v27  ;;  %vm1167_vm0 = vcmp.gt.f32.partialorder %v711_v25, 0.0 }
 0x119   :  { %v1293_v34 = vmul.f32 0.01, %v703_v29  ;;  %v706_v35 = vadd.f32 %v3186_v7, %v705_v33  ;;  %2744 = vmatmul.mubr.bf16.gmra.mrb[12].mxu1 %v1540_v24  ;;  %vm1165_vm1 = vcmp.gt.f32.partialorder %v703_v29, 0.0 }
 0x11a   :  { %vm1168_vm2 = vcmp.gt.f32.partialorder %v714_v32, 0.0  ;;  %v1296_v36 = vmul.f32 0.01, %v714_v32  ;;  %2712 = vmatmul.mubr.bf16.gmra.mrb[124].mxu0 %v2938_v28  ;;  %v1423_v38 = vsel %vm1167_vm0, %v711_v25, %v1295_v31 }
 0x11b   :  { %vm1166_vm3 = vcmp.gt.f32.partialorder %v706_v35, 0.0  ;;  %v1294_v37 = vmul.f32 0.01, %v706_v35  ;;  %v1421_v41 = vsel %vm1165_vm1, %v703_v29, %v1293_v34 }
 0x11c   :  { %v1424_v39 = vsel %vm1168_vm2, %v714_v32, %v1296_v36 }
 0x11d   :  { %v2609_v40 = vpop.f32.mrb[20].mxu0  ;;  %v1422_v42 = vsel %vm1166_vm3, %v706_v35, %v1294_v37  ;;  %v1542_v43 = vpack.c.bf16 %v1424_v39, %v1423_v38 }
 0x11e   :  { %v727_v44 = vadd.f32 %v2609_v40, %v3186_v7  ;;  %v718_v45 = vpop.f32.mrb[21].mxu0  ;;  %v1541_v46 = vpack.c.bf16 %v1422_v42, %v1421_v41 }
 0x11f   :  { %v719_v47 = vadd.f32 %v3186_v7, %v718_v45  ;;  %v2610_v48 = vpop.f32.mrb[22].mxu0 }
 0x120   :  { %v1299_v49 = vmul.f32 0.01, %v727_v44  ;;  %v730_v50 = vadd.f32 %v2610_v48, %v3186_v7  ;;  %v721_v51 = vpop.f32.mrb[23].mxu0  ;;  %2747 = vmatprep.mubr.bf16.mxu1 %v1541_v46  ;;  %vm1171_vm4 = vcmp.gt.f32.partialorder %v727_v44, 0.0 }
 0x121   :  { %v1297_v52 = vmul.f32 0.01, %v719_v47  ;;  %v722_v53 = vadd.f32 %v3186_v7, %v721_v51  ;;  %2748 = vmatmul.mubr.bf16.gmra.mrb[16].mxu1 %v1542_v43  ;;  %vm1169_vm5 = vcmp.gt.f32.partialorder %v719_v47, 0.0 }
 0x122   :  { %vm1172_vm6 = vcmp.gt.f32.partialorder %v730_v50, 0.0  ;;  %v1300_v54 = vmul.f32 0.01, %v730_v50  ;;  %v1427_v56 = vsel %vm1171_vm4, %v727_v44, %v1299_v49 }
 0x123   :  { %vm1170_vm7 = vcmp.gt.f32.partialorder %v722_v53, 0.0  ;;  %v1298_v55 = vmul.f32 0.01, %v722_v53  ;;  %v1425_v59 = vsel %vm1169_vm5, %v719_v47, %v1297_v52 }
 0x124   :  { %v1428_v57 = vsel %vm1172_vm6, %v730_v50, %v1300_v54 }
 0x125   :  { %v2613_v58 = vpop.f32.mrb[24].mxu0  ;;  %v1426_v60 = vsel %vm1170_vm7, %v722_v53, %v1298_v55  ;;  %v1544_v61 = vpack.c.bf16 %v1428_v57, %v1427_v56 }
 0x126   :  { %v743_v62 = vadd.f32 %v2613_v58, %v3186_v7  ;;  %v734_v63 = vpop.f32.mrb[25].mxu0  ;;  %v1543_v0 = vpack.c.bf16 %v1426_v60, %v1425_v59 }
 0x127   :  { %v735_v1 = vadd.f32 %v3186_v7, %v734_v63  ;;  %v2614_v2 = vpop.f32.mrb[26].mxu0 }
 0x128   :  { %v1303_v3 = vmul.f32 0.01, %v743_v62  ;;  %v746_v4 = vadd.f32 %v2614_v2, %v3186_v7  ;;  %v737_v5 = vpop.f32.mrb[27].mxu0  ;;  %2751 = vmatprep.mubr.bf16.mxu1 %v1543_v0  ;;  %vm1175_vm8 = vcmp.gt.f32.partialorder %v743_v62, 0.0 }
 0x129   :  { %v1301_v6 = vmul.f32 0.01, %v735_v1  ;;  %v738_v8 = vadd.f32 %v3186_v7, %v737_v5  ;;  %2752 = vmatmul.mubr.bf16.gmra.mrb[20].mxu1 %v1544_v61  ;;  %vm1173_vm9 = vcmp.gt.f32.partialorder %v735_v1, 0.0 }
 0x12a   :  { %vm1176_vm10 = vcmp.gt.f32.partialorder %v746_v4, 0.0  ;;  %v1304_v9 = vmul.f32 0.01, %v746_v4  ;;  %v1431_v11 = vsel %vm1175_vm8, %v743_v62, %v1303_v3 }
 0x12b   :  { %vm1174_vm11 = vcmp.gt.f32.partialorder %v738_v8, 0.0  ;;  %v1302_v10 = vmul.f32 0.01, %v738_v8  ;;  %v1429_v14 = vsel %vm1173_vm9, %v735_v1, %v1301_v6 }
 0x12c   :  { %v1432_v12 = vsel %vm1176_vm10, %v746_v4, %v1304_v9 }
 0x12d   :  { %v2617_v13 = vpop.f32.mrb[28].mxu0  ;;  %v1430_v15 = vsel %vm1174_vm11, %v738_v8, %v1302_v10  ;;  %v1546_v16 = vpack.c.bf16 %v1432_v12, %v1431_v11 }
 0x12e   :  { %v759_v17 = vadd.f32 %v2617_v13, %v3186_v7  ;;  %v750_v18 = vpop.f32.mrb[29].mxu0  ;;  %v1545_v19 = vpack.c.bf16 %v1430_v15, %v1429_v14 }
 0x12f   :  { %v751_v20 = vadd.f32 %v3186_v7, %v750_v18  ;;  %v2618_v21 = vpop.f32.mrb[30].mxu0 }
 0x130   :  { %v1307_v22 = vmul.f32 0.01, %v759_v17  ;;  %v762_v23 = vadd.f32 %v2618_v21, %v3186_v7  ;;  %v753_v24 = vpop.f32.mrb[31].mxu0  ;;  %2755 = vmatprep.mubr.bf16.mxu1 %v1545_v19  ;;  %vm1179_vm12 = vcmp.gt.f32.partialorder %v759_v17, 0.0 }
 0x131   :  { %v1305_v25 = vmul.f32 0.01, %v751_v20  ;;  %v754_v26 = vadd.f32 %v3186_v7, %v753_v24  ;;  %2756 = vmatmul.mubr.bf16.gmra.mrb[24].mxu1 %v1546_v16  ;;  %vm1177_vm13 = vcmp.gt.f32.partialorder %v751_v20, 0.0 }
 0x132   :  { %vm1180_vm14 = vcmp.gt.f32.partialorder %v762_v23, 0.0  ;;  %v1308_v27 = vmul.f32 0.01, %v762_v23  ;;  %v1435_v29 = vsel %vm1179_vm12, %v759_v17, %v1307_v22 }
 0x133   :  { %vm1178_vm15 = vcmp.gt.f32.partialorder %v754_v26, 0.0  ;;  %v1306_v28 = vmul.f32 0.01, %v754_v26  ;;  %v1433_v32 = vsel %vm1177_vm13, %v751_v20, %v1305_v25 }
 0x134   :  { %v1436_v30 = vsel %vm1180_vm14, %v762_v23, %v1308_v27 }
 0x135   :  { %v2621_v31 = vpop.f32.mrb[32].mxu0  ;;  %v1434_v33 = vsel %vm1178_vm15, %v754_v26, %v1306_v28  ;;  %v1548_v34 = vpack.c.bf16 %v1436_v30, %v1435_v29 }
 0x136   :  { %v775_v35 = vadd.f32 %v2621_v31, %v3186_v7  ;;  %v766_v36 = vpop.f32.mrb[33].mxu0  ;;  %v1547_v37 = vpack.c.bf16 %v1434_v33, %v1433_v32 }
 0x137   :  { %v767_v38 = vadd.f32 %v3186_v7, %v766_v36  ;;  %v2622_v39 = vpop.f32.mrb[34].mxu0 }
 0x138   :  { %v1311_v40 = vmul.f32 0.01, %v775_v35  ;;  %v778_v41 = vadd.f32 %v2622_v39, %v3186_v7  ;;  %v769_v42 = vpop.f32.mrb[35].mxu0  ;;  %2759 = vmatprep.mubr.bf16.mxu1 %v1547_v37  ;;  %vm1183_vm0 = vcmp.gt.f32.partialorder %v775_v35, 0.0 }
 0x139   :  { %v1309_v43 = vmul.f32 0.01, %v767_v38  ;;  %v770_v44 = vadd.f32 %v3186_v7, %v769_v42  ;;  %2760 = vmatmul.mubr.bf16.gmra.mrb[28].mxu1 %v1548_v34  ;;  %vm1181_vm1 = vcmp.gt.f32.partialorder %v767_v38, 0.0 }
 0x13a   :  { %vm1184_vm2 = vcmp.gt.f32.partialorder %v778_v41, 0.0  ;;  %v1312_v45 = vmul.f32 0.01, %v778_v41  ;;  %v1439_v47 = vsel %vm1183_vm0, %v775_v35, %v1311_v40 }
 0x13b   :  { %vm1182_vm3 = vcmp.gt.f32.partialorder %v770_v44, 0.0  ;;  %v1310_v46 = vmul.f32 0.01, %v770_v44  ;;  %v1437_v50 = vsel %vm1181_vm1, %v767_v38, %v1309_v43 }
 0x13c   :  { %v1440_v48 = vsel %vm1184_vm2, %v778_v41, %v1312_v45 }
 0x13d   :  { %v2625_v49 = vpop.f32.mrb[36].mxu0  ;;  %v1438_v51 = vsel %vm1182_vm3, %v770_v44, %v1310_v46  ;;  %v1550_v52 = vpack.c.bf16 %v1440_v48, %v1439_v47 }
 0x13e   :  { %v791_v53 = vadd.f32 %v2625_v49, %v3186_v7  ;;  %v782_v54 = vpop.f32.mrb[37].mxu0  ;;  %v1549_v55 = vpack.c.bf16 %v1438_v51, %v1437_v50 }
 0x13f   :  { %v783_v56 = vadd.f32 %v3186_v7, %v782_v54  ;;  %v2626_v57 = vpop.f32.mrb[38].mxu0 }
 0x140   :  { %v1315_v58 = vmul.f32 0.01, %v791_v53  ;;  %v794_v59 = vadd.f32 %v2626_v57, %v3186_v7  ;;  %v785_v60 = vpop.f32.mrb[39].mxu0  ;;  %2763 = vmatprep.mubr.bf16.mxu1 %v1549_v55  ;;  %vm1187_vm4 = vcmp.gt.f32.partialorder %v791_v53, 0.0 }
 0x141   :  { %v1313_v61 = vmul.f32 0.01, %v783_v56  ;;  %v786_v62 = vadd.f32 %v3186_v7, %v785_v60  ;;  %2764 = vmatmul.mubr.bf16.gmra.mrb[32].mxu1 %v1550_v52  ;;  %vm1185_vm5 = vcmp.gt.f32.partialorder %v783_v56, 0.0 }
 0x142   :  { %vm1188_vm6 = vcmp.gt.f32.partialorder %v794_v59, 0.0  ;;  %v1316_v63 = vmul.f32 0.01, %v794_v59  ;;  %v1443_v1 = vsel %vm1187_vm4, %v791_v53, %v1315_v58 }
 0x143   :  { %vm1186_vm7 = vcmp.gt.f32.partialorder %v786_v62, 0.0  ;;  %v1314_v0 = vmul.f32 0.01, %v786_v62  ;;  %v1441_v4 = vsel %vm1185_vm5, %v783_v56, %v1313_v61 }
 0x144   :  { %v1444_v2 = vsel %vm1188_vm6, %v794_v59, %v1316_v63 }
 0x145   :  { %v2629_v3 = vpop.f32.mrb[40].mxu0  ;;  %v1442_v5 = vsel %vm1186_vm7, %v786_v62, %v1314_v0  ;;  %v1552_v6 = vpack.c.bf16 %v1444_v2, %v1443_v1 }
 0x146   :  { %v807_v8 = vadd.f32 %v2629_v3, %v3186_v7  ;;  %v798_v9 = vpop.f32.mrb[41].mxu0  ;;  %v1551_v10 = vpack.c.bf16 %v1442_v5, %v1441_v4 }
 0x147   :  { %v799_v11 = vadd.f32 %v3186_v7, %v798_v9  ;;  %v2630_v12 = vpop.f32.mrb[42].mxu0 }
 0x148   :  { %v1319_v13 = vmul.f32 0.01, %v807_v8  ;;  %v810_v14 = vadd.f32 %v2630_v12, %v3186_v7  ;;  %v801_v15 = vpop.f32.mrb[43].mxu0  ;;  %2767 = vmatprep.mubr.bf16.mxu1 %v1551_v10  ;;  %vm1191_vm8 = vcmp.gt.f32.partialorder %v807_v8, 0.0 }
 0x149   :  { %v1317_v16 = vmul.f32 0.01, %v799_v11  ;;  %v802_v17 = vadd.f32 %v3186_v7, %v801_v15  ;;  %2768 = vmatmul.mubr.bf16.gmra.mrb[36].mxu1 %v1552_v6  ;;  %vm1189_vm9 = vcmp.gt.f32.partialorder %v799_v11, 0.0 }
 0x14a   :  { %vm1192_vm10 = vcmp.gt.f32.partialorder %v810_v14, 0.0  ;;  %v1320_v18 = vmul.f32 0.01, %v810_v14  ;;  %v1447_v20 = vsel %vm1191_vm8, %v807_v8, %v1319_v13 }
 0x14b   :  { %vm1190_vm11 = vcmp.gt.f32.partialorder %v802_v17, 0.0  ;;  %v1318_v19 = vmul.f32 0.01, %v802_v17  ;;  %v1445_v23 = vsel %vm1189_vm9, %v799_v11, %v1317_v16 }
 0x14c   :  { %v1448_v21 = vsel %vm1192_vm10, %v810_v14, %v1320_v18 }
 0x14d   :  { %v2633_v22 = vpop.f32.mrb[44].mxu0  ;;  %v1446_v24 = vsel %vm1190_vm11, %v802_v17, %v1318_v19  ;;  %v1554_v25 = vpack.c.bf16 %v1448_v21, %v1447_v20 }
 0x14e   :  { %v823_v26 = vadd.f32 %v2633_v22, %v3186_v7  ;;  %v814_v27 = vpop.f32.mrb[45].mxu0  ;;  %v1553_v28 = vpack.c.bf16 %v1446_v24, %v1445_v23 }
 0x14f   :  { %v815_v29 = vadd.f32 %v3186_v7, %v814_v27  ;;  %v2634_v30 = vpop.f32.mrb[46].mxu0 }
 0x150   :  { %v1323_v31 = vmul.f32 0.01, %v823_v26  ;;  %v826_v32 = vadd.f32 %v2634_v30, %v3186_v7  ;;  %v817_v33 = vpop.f32.mrb[47].mxu0  ;;  %2771 = vmatprep.mubr.bf16.mxu1 %v1553_v28  ;;  %vm1195_vm12 = vcmp.gt.f32.partialorder %v823_v26, 0.0 }
 0x151   :  { %v1321_v34 = vmul.f32 0.01, %v815_v29  ;;  %v818_v35 = vadd.f32 %v3186_v7, %v817_v33  ;;  %2772 = vmatmul.mubr.bf16.gmra.mrb[40].mxu1 %v1554_v25  ;;  %vm1193_vm13 = vcmp.gt.f32.partialorder %v815_v29, 0.0 }
 0x152   :  { %vm1196_vm14 = vcmp.gt.f32.partialorder %v826_v32, 0.0  ;;  %v1324_v36 = vmul.f32 0.01, %v826_v32  ;;  %v1451_v38 = vsel %vm1195_vm12, %v823_v26, %v1323_v31 }
 0x153   :  { %vm1194_vm15 = vcmp.gt.f32.partialorder %v818_v35, 0.0  ;;  %v1322_v37 = vmul.f32 0.01, %v818_v35  ;;  %v1449_v41 = vsel %vm1193_vm13, %v815_v29, %v1321_v34 }
 0x154   :  { %v1452_v39 = vsel %vm1196_vm14, %v826_v32, %v1324_v36 }
 0x155   :  { %v2637_v40 = vpop.f32.mrb[48].mxu0  ;;  %v1450_v42 = vsel %vm1194_vm15, %v818_v35, %v1322_v37  ;;  %v1556_v43 = vpack.c.bf16 %v1452_v39, %v1451_v38 }
 0x156   :  { %v839_v44 = vadd.f32 %v2637_v40, %v3186_v7  ;;  %v830_v45 = vpop.f32.mrb[49].mxu0  ;;  %v1555_v46 = vpack.c.bf16 %v1450_v42, %v1449_v41 }
 0x157   :  { %v831_v47 = vadd.f32 %v3186_v7, %v830_v45  ;;  %v2638_v48 = vpop.f32.mrb[50].mxu0 }
 0x158   :  { %v1327_v49 = vmul.f32 0.01, %v839_v44  ;;  %v842_v50 = vadd.f32 %v2638_v48, %v3186_v7  ;;  %v833_v51 = vpop.f32.mrb[51].mxu0  ;;  %2775 = vmatprep.mubr.bf16.mxu1 %v1555_v46  ;;  %vm1199_vm0 = vcmp.gt.f32.partialorder %v839_v44, 0.0 }
 0x159   :  { %v1325_v52 = vmul.f32 0.01, %v831_v47  ;;  %v834_v53 = vadd.f32 %v3186_v7, %v833_v51  ;;  %2776 = vmatmul.mubr.bf16.gmra.mrb[44].mxu1 %v1556_v43  ;;  %vm1197_vm1 = vcmp.gt.f32.partialorder %v831_v47, 0.0 }
 0x15a   :  { %vm1200_vm2 = vcmp.gt.f32.partialorder %v842_v50, 0.0  ;;  %v1328_v54 = vmul.f32 0.01, %v842_v50  ;;  %v1455_v56 = vsel %vm1199_vm0, %v839_v44, %v1327_v49 }
 0x15b   :  { %vm1198_vm3 = vcmp.gt.f32.partialorder %v834_v53, 0.0  ;;  %v1326_v55 = vmul.f32 0.01, %v834_v53  ;;  %v1453_v59 = vsel %vm1197_vm1, %v831_v47, %v1325_v52 }
 0x15c   :  { %v1456_v57 = vsel %vm1200_vm2, %v842_v50, %v1328_v54 }
 0x15d   :  { %v2641_v58 = vpop.f32.mrb[52].mxu0  ;;  %v1454_v60 = vsel %vm1198_vm3, %v834_v53, %v1326_v55  ;;  %v1558_v61 = vpack.c.bf16 %v1456_v57, %v1455_v56 }
 0x15e   :  { %v855_v62 = vadd.f32 %v2641_v58, %v3186_v7  ;;  %v846_v63 = vpop.f32.mrb[53].mxu0  ;;  %v1557_v0 = vpack.c.bf16 %v1454_v60, %v1453_v59 }
 0x15f   :  { %v847_v1 = vadd.f32 %v3186_v7, %v846_v63  ;;  %v2642_v2 = vpop.f32.mrb[54].mxu0 }
 0x160   :  { %v1331_v3 = vmul.f32 0.01, %v855_v62  ;;  %v858_v4 = vadd.f32 %v2642_v2, %v3186_v7  ;;  %v849_v5 = vpop.f32.mrb[55].mxu0  ;;  %2779 = vmatprep.mubr.bf16.mxu1 %v1557_v0  ;;  %vm1203_vm4 = vcmp.gt.f32.partialorder %v855_v62, 0.0 }
 0x161   :  { %v1329_v6 = vmul.f32 0.01, %v847_v1  ;;  %v850_v8 = vadd.f32 %v3186_v7, %v849_v5  ;;  %2780 = vmatmul.mubr.bf16.gmra.mrb[48].mxu1 %v1558_v61  ;;  %vm1201_vm5 = vcmp.gt.f32.partialorder %v847_v1, 0.0 }
 0x162   :  { %vm1204_vm6 = vcmp.gt.f32.partialorder %v858_v4, 0.0  ;;  %v1332_v9 = vmul.f32 0.01, %v858_v4  ;;  %v1459_v11 = vsel %vm1203_vm4, %v855_v62, %v1331_v3 }
 0x163   :  { %vm1202_vm7 = vcmp.gt.f32.partialorder %v850_v8, 0.0  ;;  %v1330_v10 = vmul.f32 0.01, %v850_v8  ;;  %v1457_v14 = vsel %vm1201_vm5, %v847_v1, %v1329_v6 }
 0x164   :  { %v1460_v12 = vsel %vm1204_vm6, %v858_v4, %v1332_v9 }
 0x165   :  { %v2645_v13 = vpop.f32.mrb[56].mxu0  ;;  %v1458_v15 = vsel %vm1202_vm7, %v850_v8, %v1330_v10  ;;  %v1560_v16 = vpack.c.bf16 %v1460_v12, %v1459_v11 }
 0x166   :  { %v871_v17 = vadd.f32 %v2645_v13, %v3186_v7  ;;  %v862_v18 = vpop.f32.mrb[57].mxu0  ;;  %v1559_v19 = vpack.c.bf16 %v1458_v15, %v1457_v14 }
 0x167   :  { %v863_v20 = vadd.f32 %v3186_v7, %v862_v18  ;;  %v2646_v21 = vpop.f32.mrb[58].mxu0 }
 0x168   :  { %v1335_v22 = vmul.f32 0.01, %v871_v17  ;;  %v874_v23 = vadd.f32 %v2646_v21, %v3186_v7  ;;  %v865_v24 = vpop.f32.mrb[59].mxu0  ;;  %2783 = vmatprep.mubr.bf16.mxu1 %v1559_v19  ;;  %vm1207_vm8 = vcmp.gt.f32.partialorder %v871_v17, 0.0 }
 0x169   :  { %v1333_v25 = vmul.f32 0.01, %v863_v20  ;;  %v866_v26 = vadd.f32 %v3186_v7, %v865_v24  ;;  %2784 = vmatmul.mubr.bf16.gmra.mrb[52].mxu1 %v1560_v16  ;;  %vm1205_vm9 = vcmp.gt.f32.partialorder %v863_v20, 0.0 }
 0x16a   :  { %vm1208_vm10 = vcmp.gt.f32.partialorder %v874_v23, 0.0  ;;  %v1336_v27 = vmul.f32 0.01, %v874_v23  ;;  %v1463_v29 = vsel %vm1207_vm8, %v871_v17, %v1335_v22 }
 0x16b   :  { %vm1206_vm11 = vcmp.gt.f32.partialorder %v866_v26, 0.0  ;;  %v1334_v28 = vmul.f32 0.01, %v866_v26  ;;  %v1461_v32 = vsel %vm1205_vm9, %v863_v20, %v1333_v25 }
 0x16c   :  { %v1464_v30 = vsel %vm1208_vm10, %v874_v23, %v1336_v27 }
 0x16d   :  { %v2649_v31 = vpop.f32.mrb[60].mxu0  ;;  %v1462_v33 = vsel %vm1206_vm11, %v866_v26, %v1334_v28  ;;  %v1562_v34 = vpack.c.bf16 %v1464_v30, %v1463_v29 }
 0x16e   :  { %v887_v35 = vadd.f32 %v2649_v31, %v3186_v7  ;;  %v878_v36 = vpop.f32.mrb[61].mxu0  ;;  %v1561_v37 = vpack.c.bf16 %v1462_v33, %v1461_v32 }
 0x16f   :  { %v879_v38 = vadd.f32 %v3186_v7, %v878_v36  ;;  %v2650_v39 = vpop.f32.mrb[62].mxu0 }
 0x170   :  { %v1339_v40 = vmul.f32 0.01, %v887_v35  ;;  %v890_v41 = vadd.f32 %v2650_v39, %v3186_v7  ;;  %v881_v42 = vpop.f32.mrb[63].mxu0  ;;  %2787 = vmatprep.mubr.bf16.mxu1 %v1561_v37  ;;  %vm1211_vm12 = vcmp.gt.f32.partialorder %v887_v35, 0.0 }
 0x171   :  { %v1337_v43 = vmul.f32 0.01, %v879_v38  ;;  %v882_v44 = vadd.f32 %v3186_v7, %v881_v42  ;;  %2788 = vmatmul.mubr.bf16.gmra.mrb[56].mxu1 %v1562_v34  ;;  %vm1209_vm13 = vcmp.gt.f32.partialorder %v879_v38, 0.0 }
 0x172   :  { %vm1212_vm14 = vcmp.gt.f32.partialorder %v890_v41, 0.0  ;;  %v1340_v45 = vmul.f32 0.01, %v890_v41  ;;  %v1467_v47 = vsel %vm1211_vm12, %v887_v35, %v1339_v40 }
 0x173   :  { %vm1210_vm15 = vcmp.gt.f32.partialorder %v882_v44, 0.0  ;;  %v1338_v46 = vmul.f32 0.01, %v882_v44  ;;  %v1465_v50 = vsel %vm1209_vm13, %v879_v38, %v1337_v43 }
 0x174   :  { %v1468_v48 = vsel %vm1212_vm14, %v890_v41, %v1340_v45 }
 0x175   :  { %v2653_v49 = vpop.f32.mrb[64].mxu0  ;;  %v1466_v51 = vsel %vm1210_vm15, %v882_v44, %v1338_v46  ;;  %v1564_v52 = vpack.c.bf16 %v1468_v48, %v1467_v47 }
 0x176   :  { %v903_v53 = vadd.f32 %v2653_v49, %v3186_v7  ;;  %v894_v54 = vpop.f32.mrb[65].mxu0  ;;  %v1563_v55 = vpack.c.bf16 %v1466_v51, %v1465_v50 }
 0x177   :  { %v895_v56 = vadd.f32 %v3186_v7, %v894_v54  ;;  %v2654_v57 = vpop.f32.mrb[66].mxu0 }
 0x178   :  { %v1343_v58 = vmul.f32 0.01, %v903_v53  ;;  %v906_v59 = vadd.f32 %v2654_v57, %v3186_v7  ;;  %v897_v60 = vpop.f32.mrb[67].mxu0  ;;  %2791 = vmatprep.mubr.bf16.mxu1 %v1563_v55  ;;  %vm1215_vm0 = vcmp.gt.f32.partialorder %v903_v53, 0.0 }
 0x179   :  { %v1341_v61 = vmul.f32 0.01, %v895_v56  ;;  %v898_v62 = vadd.f32 %v3186_v7, %v897_v60  ;;  %2792 = vmatmul.mubr.bf16.gmra.mrb[60].mxu1 %v1564_v52  ;;  %vm1213_vm1 = vcmp.gt.f32.partialorder %v895_v56, 0.0 }
 0x17a   :  { %vm1216_vm2 = vcmp.gt.f32.partialorder %v906_v59, 0.0  ;;  %v1344_v63 = vmul.f32 0.01, %v906_v59  ;;  %v1471_v1 = vsel %vm1215_vm0, %v903_v53, %v1343_v58 }
 0x17b   :  { %vm1214_vm3 = vcmp.gt.f32.partialorder %v898_v62, 0.0  ;;  %v1342_v0 = vmul.f32 0.01, %v898_v62  ;;  %v1469_v4 = vsel %vm1213_vm1, %v895_v56, %v1341_v61 }
 0x17c   :  { %v1472_v2 = vsel %vm1216_vm2, %v906_v59, %v1344_v63 }
 0x17d   :  { %v2657_v3 = vpop.f32.mrb[68].mxu0  ;;  %v1470_v5 = vsel %vm1214_vm3, %v898_v62, %v1342_v0  ;;  %v1566_v6 = vpack.c.bf16 %v1472_v2, %v1471_v1 }
 0x17e   :  { %v919_v8 = vadd.f32 %v2657_v3, %v3186_v7  ;;  %v910_v9 = vpop.f32.mrb[69].mxu0  ;;  %v1565_v10 = vpack.c.bf16 %v1470_v5, %v1469_v4 }
 0x17f   :  { %v911_v11 = vadd.f32 %v3186_v7, %v910_v9  ;;  %v2658_v12 = vpop.f32.mrb[70].mxu0 }
 0x180   :  { %v1347_v13 = vmul.f32 0.01, %v919_v8  ;;  %v922_v14 = vadd.f32 %v2658_v12, %v3186_v7  ;;  %v913_v15 = vpop.f32.mrb[71].mxu0  ;;  %2795 = vmatprep.mubr.bf16.mxu1 %v1565_v10  ;;  %vm1219_vm4 = vcmp.gt.f32.partialorder %v919_v8, 0.0 }
 0x181   :  { %v1345_v16 = vmul.f32 0.01, %v911_v11  ;;  %v914_v17 = vadd.f32 %v3186_v7, %v913_v15  ;;  %2796 = vmatmul.mubr.bf16.gmra.mrb[64].mxu1 %v1566_v6  ;;  %vm1217_vm5 = vcmp.gt.f32.partialorder %v911_v11, 0.0 }
 0x182   :  { %vm1220_vm6 = vcmp.gt.f32.partialorder %v922_v14, 0.0  ;;  %v1348_v18 = vmul.f32 0.01, %v922_v14  ;;  %v1475_v20 = vsel %vm1219_vm4, %v919_v8, %v1347_v13 }
 0x183   :  { %vm1218_vm7 = vcmp.gt.f32.partialorder %v914_v17, 0.0  ;;  %v1346_v19 = vmul.f32 0.01, %v914_v17  ;;  %v1473_v23 = vsel %vm1217_vm5, %v911_v11, %v1345_v16 }
 0x184   :  { %v1476_v21 = vsel %vm1220_vm6, %v922_v14, %v1348_v18 }
 0x185   :  { %v2661_v22 = vpop.f32.mrb[72].mxu0  ;;  %v1474_v24 = vsel %vm1218_vm7, %v914_v17, %v1346_v19  ;;  %v1568_v25 = vpack.c.bf16 %v1476_v21, %v1475_v20  ;;  %v3302_v17 = vld [vmem:[%s3868_s2] ss:$0 sm:$0xff] }
 0x186   :  { %v935_v26 = vadd.f32 %v2661_v22, %v3186_v7  ;;  %v926_v27 = vpop.f32.mrb[73].mxu0  ;;  %v1567_v28 = vpack.c.bf16 %v1474_v24, %v1473_v23 }
 0x187   :  { %v927_v29 = vadd.f32 %v3186_v7, %v926_v27  ;;  %v2662_v30 = vpop.f32.mrb[74].mxu0 }
 0x188   :  { %v1351_v31 = vmul.f32 0.01, %v935_v26  ;;  %v938_v32 = vadd.f32 %v2662_v30, %v3186_v7  ;;  %v929_v33 = vpop.f32.mrb[75].mxu0  ;;  %2799 = vmatprep.mubr.bf16.mxu1 %v1567_v28  ;;  %vm1223_vm8 = vcmp.gt.f32.partialorder %v935_v26, 0.0 }
 0x189   :  { %v1349_v34 = vmul.f32 0.01, %v927_v29  ;;  %v930_v35 = vadd.f32 %v3186_v7, %v929_v33  ;;  %2800 = vmatmul.mubr.bf16.gmra.mrb[68].mxu1 %v1568_v25  ;;  %vm1221_vm9 = vcmp.gt.f32.partialorder %v927_v29, 0.0 }
 0x18a   :  { %vm1224_vm10 = vcmp.gt.f32.partialorder %v938_v32, 0.0  ;;  %v1352_v36 = vmul.f32 0.01, %v938_v32  ;;  %v1479_v38 = vsel %vm1223_vm8, %v935_v26, %v1351_v31 }
 0x18b   :  { %vm1222_vm11 = vcmp.gt.f32.partialorder %v930_v35, 0.0  ;;  %v1350_v37 = vmul.f32 0.01, %v930_v35  ;;  %v1477_v41 = vsel %vm1221_vm9, %v927_v29, %v1349_v34 }
 0x18c   :  { %v1480_v39 = vsel %vm1224_vm10, %v938_v32, %v1352_v36 }
 0x18d   :  { %v2665_v40 = vpop.f32.mrb[76].mxu0  ;;  %v1478_v42 = vsel %vm1222_vm11, %v930_v35, %v1350_v37  ;;  %v1570_v43 = vpack.c.bf16 %v1480_v39, %v1479_v38 }
 0x18e   :  { %v951_v44 = vadd.f32 %v2665_v40, %v3186_v7  ;;  %v942_v45 = vpop.f32.mrb[77].mxu0  ;;  %v1569_v46 = vpack.c.bf16 %v1478_v42, %v1477_v41 }
 0x18f   :  { %v943_v47 = vadd.f32 %v3186_v7, %v942_v45  ;;  %v2666_v48 = vpop.f32.mrb[78].mxu0 }
 0x190   :  { %v1355_v49 = vmul.f32 0.01, %v951_v44  ;;  %v954_v50 = vadd.f32 %v2666_v48, %v3186_v7  ;;  %v945_v51 = vpop.f32.mrb[79].mxu0  ;;  %2803 = vmatprep.mubr.bf16.mxu1 %v1569_v46  ;;  %vm1227_vm12 = vcmp.gt.f32.partialorder %v951_v44, 0.0 }
 0x191   :  { %v1353_v52 = vmul.f32 0.01, %v943_v47  ;;  %v946_v53 = vadd.f32 %v3186_v7, %v945_v51  ;;  %2804 = vmatmul.mubr.bf16.gmra.mrb[72].mxu1 %v1570_v43  ;;  %vm1225_vm13 = vcmp.gt.f32.partialorder %v943_v47, 0.0 }
 0x192   :  { %vm1228_vm14 = vcmp.gt.f32.partialorder %v954_v50, 0.0  ;;  %v1356_v54 = vmul.f32 0.01, %v954_v50  ;;  %v1483_v56 = vsel %vm1227_vm12, %v951_v44, %v1355_v49 }
 0x193   :  { %vm1226_vm15 = vcmp.gt.f32.partialorder %v946_v53, 0.0  ;;  %v1354_v55 = vmul.f32 0.01, %v946_v53  ;;  %v1481_v59 = vsel %vm1225_vm13, %v943_v47, %v1353_v52 }
 0x194   :  { %v1484_v57 = vsel %vm1228_vm14, %v954_v50, %v1356_v54 }
 0x195   :  { %v2669_v58 = vpop.f32.mrb[80].mxu0  ;;  %v1482_v60 = vsel %vm1226_vm15, %v946_v53, %v1354_v55  ;;  %v1572_v61 = vpack.c.bf16 %v1484_v57, %v1483_v56 }
 0x196   :  { %v967_v62 = vadd.f32 %v2669_v58, %v3186_v7  ;;  %v958_v63 = vpop.f32.mrb[81].mxu0  ;;  %v1571_v0 = vpack.c.bf16 %v1482_v60, %v1481_v59 }
 0x197   :  { %v959_v1 = vadd.f32 %v3186_v7, %v958_v63  ;;  %v2670_v2 = vpop.f32.mrb[82].mxu0 }
 0x198   :  { %v1359_v3 = vmul.f32 0.01, %v967_v62  ;;  %v970_v4 = vadd.f32 %v2670_v2, %v3186_v7  ;;  %v961_v5 = vpop.f32.mrb[83].mxu0  ;;  %2807 = vmatprep.mubr.bf16.mxu1 %v1571_v0  ;;  %vm1231_vm0 = vcmp.gt.f32.partialorder %v967_v62, 0.0 }
 0x199   :  { %v1357_v6 = vmul.f32 0.01, %v959_v1  ;;  %v962_v8 = vadd.f32 %v3186_v7, %v961_v5  ;;  %2808 = vmatmul.mubr.bf16.gmra.mrb[76].mxu1 %v1572_v61  ;;  %vm1229_vm1 = vcmp.gt.f32.partialorder %v959_v1, 0.0 }
 0x19a   :  { %vm1232_vm2 = vcmp.gt.f32.partialorder %v970_v4, 0.0  ;;  %v1360_v9 = vmul.f32 0.01, %v970_v4  ;;  %v1487_v11 = vsel %vm1231_vm0, %v967_v62, %v1359_v3 }
 0x19b   :  { %vm1230_vm3 = vcmp.gt.f32.partialorder %v962_v8, 0.0  ;;  %v1358_v10 = vmul.f32 0.01, %v962_v8  ;;  %v1485_v14 = vsel %vm1229_vm1, %v959_v1, %v1357_v6 }
 0x19c   :  { %v1488_v12 = vsel %vm1232_vm2, %v970_v4, %v1360_v9 }
 0x19d   :  { %v2673_v13 = vpop.f32.mrb[84].mxu0  ;;  %v1486_v15 = vsel %vm1230_vm3, %v962_v8, %v1358_v10  ;;  %v1574_v16 = vpack.c.bf16 %v1488_v12, %v1487_v11 }
 0x19e   :  { %v983_v18 = vadd.f32 %v3302_v17, %v2673_v13  ;;  %v974_v7 = vpop.f32.mrb[85].mxu0  ;;  %v1573_v19 = vpack.c.bf16 %v1486_v15, %v1485_v14 }
 0x19f   :  { %v975_v20 = vadd.f32 %v3302_v17, %v974_v7  ;;  %v2674_v21 = vpop.f32.mrb[86].mxu0 }
 0x1a0   :  { %v1363_v22 = vmul.f32 0.01, %v983_v18  ;;  %v986_v23 = vadd.f32 %v3302_v17, %v2674_v21  ;;  %v977_v24 = vpop.f32.mrb[87].mxu0  ;;  %2811 = vmatprep.mubr.bf16.mxu1 %v1573_v19  ;;  %vm1235_vm4 = vcmp.gt.f32.partialorder %v983_v18, 0.0 }
 0x1a1   :  { %v1361_v25 = vmul.f32 0.01, %v975_v20  ;;  %v978_v26 = vadd.f32 %v3302_v17, %v977_v24  ;;  %2812 = vmatmul.mubr.bf16.gmra.mrb[80].mxu1 %v1574_v16  ;;  %vm1233_vm5 = vcmp.gt.f32.partialorder %v975_v20, 0.0 }
 0x1a2   :  { %vm1236_vm6 = vcmp.gt.f32.partialorder %v986_v23, 0.0  ;;  %v1364_v27 = vmul.f32 0.01, %v986_v23  ;;  %v1491_v29 = vsel %vm1235_vm4, %v983_v18, %v1363_v22 }
 0x1a3   :  { %vm1234_vm7 = vcmp.gt.f32.partialorder %v978_v26, 0.0  ;;  %v1362_v28 = vmul.f32 0.01, %v978_v26  ;;  %v1489_v32 = vsel %vm1233_vm5, %v975_v20, %v1361_v25 }
 0x1a4   :  { %v1492_v30 = vsel %vm1236_vm6, %v986_v23, %v1364_v27 }
 0x1a5   :  { %v2677_v31 = vpop.f32.mrb[88].mxu0  ;;  %v1490_v33 = vsel %vm1234_vm7, %v978_v26, %v1362_v28  ;;  %v1576_v34 = vpack.c.bf16 %v1492_v30, %v1491_v29 }
 0x1a6   :  { %v999_v35 = vadd.f32 %v3302_v17, %v2677_v31  ;;  %v990_v36 = vpop.f32.mrb[89].mxu0  ;;  %v1575_v37 = vpack.c.bf16 %v1490_v33, %v1489_v32 }
 0x1a7   :  { %v991_v38 = vadd.f32 %v3302_v17, %v990_v36  ;;  %v2678_v39 = vpop.f32.mrb[90].mxu0 }
 0x1a8   :  { %v1367_v40 = vmul.f32 0.01, %v999_v35  ;;  %v1002_v41 = vadd.f32 %v3302_v17, %v2678_v39  ;;  %v993_v42 = vpop.f32.mrb[91].mxu0  ;;  %2815 = vmatprep.mubr.bf16.mxu1 %v1575_v37  ;;  %vm1239_vm8 = vcmp.gt.f32.partialorder %v999_v35, 0.0 }
 0x1a9   :  { %v1365_v43 = vmul.f32 0.01, %v991_v38  ;;  %v994_v44 = vadd.f32 %v3302_v17, %v993_v42  ;;  %2816 = vmatmul.mubr.bf16.gmra.mrb[84].mxu1 %v1576_v34  ;;  %vm1237_vm9 = vcmp.gt.f32.partialorder %v991_v38, 0.0 }
 0x1aa   :  { %vm1240_vm10 = vcmp.gt.f32.partialorder %v1002_v41, 0.0  ;;  %v1368_v45 = vmul.f32 0.01, %v1002_v41  ;;  %v1495_v47 = vsel %vm1239_vm8, %v999_v35, %v1367_v40 }
 0x1ab   :  { %vm1238_vm11 = vcmp.gt.f32.partialorder %v994_v44, 0.0  ;;  %v1366_v46 = vmul.f32 0.01, %v994_v44  ;;  %v1493_v50 = vsel %vm1237_vm9, %v991_v38, %v1365_v43 }
 0x1ac   :  { %v1496_v48 = vsel %vm1240_vm10, %v1002_v41, %v1368_v45 }
 0x1ad   :  { %v2681_v49 = vpop.f32.mrb[92].mxu0  ;;  %v1494_v51 = vsel %vm1238_vm11, %v994_v44, %v1366_v46  ;;  %v1578_v52 = vpack.c.bf16 %v1496_v48, %v1495_v47 }
 0x1ae   :  { %v1015_v53 = vadd.f32 %v3302_v17, %v2681_v49  ;;  %v1006_v54 = vpop.f32.mrb[93].mxu0  ;;  %v1577_v55 = vpack.c.bf16 %v1494_v51, %v1493_v50 }
 0x1af   :  { %v1007_v56 = vadd.f32 %v3302_v17, %v1006_v54  ;;  %v2682_v57 = vpop.f32.mrb[94].mxu0 }
 0x1b0   :  { %v1371_v58 = vmul.f32 0.01, %v1015_v53  ;;  %v1018_v59 = vadd.f32 %v3302_v17, %v2682_v57  ;;  %v1009_v60 = vpop.f32.mrb[95].mxu0  ;;  %2819 = vmatprep.mubr.bf16.mxu1 %v1577_v55  ;;  %vm1243_vm12 = vcmp.gt.f32.partialorder %v1015_v53, 0.0 }
 0x1b1   :  { %v1369_v61 = vmul.f32 0.01, %v1007_v56  ;;  %v1010_v62 = vadd.f32 %v3302_v17, %v1009_v60  ;;  %2820 = vmatmul.mubr.bf16.gmra.mrb[88].mxu1 %v1578_v52  ;;  %vm1241_vm13 = vcmp.gt.f32.partialorder %v1007_v56, 0.0 }
 0x1b2   :  { %vm1244_vm14 = vcmp.gt.f32.partialorder %v1018_v59, 0.0  ;;  %v1372_v63 = vmul.f32 0.01, %v1018_v59  ;;  %v1499_v1 = vsel %vm1243_vm12, %v1015_v53, %v1371_v58 }
 0x1b3   :  { %vm1242_vm15 = vcmp.gt.f32.partialorder %v1010_v62, 0.0  ;;  %v1370_v0 = vmul.f32 0.01, %v1010_v62  ;;  %v1497_v4 = vsel %vm1241_vm13, %v1007_v56, %v1369_v61 }
 0x1b4   :  { %v1500_v2 = vsel %vm1244_vm14, %v1018_v59, %v1372_v63 }
 0x1b5   :  { %v2685_v3 = vpop.f32.mrb[96].mxu0  ;;  %v1498_v5 = vsel %vm1242_vm15, %v1010_v62, %v1370_v0  ;;  %v1580_v6 = vpack.c.bf16 %v1500_v2, %v1499_v1 }
 0x1b6   :  { %v1031_v8 = vadd.f32 %v3302_v17, %v2685_v3  ;;  %v1022_v9 = vpop.f32.mrb[97].mxu0  ;;  %v1579_v10 = vpack.c.bf16 %v1498_v5, %v1497_v4 }
 0x1b7   :  { %v1023_v11 = vadd.f32 %v3302_v17, %v1022_v9  ;;  %v2686_v12 = vpop.f32.mrb[98].mxu0 }
 0x1b8   :  { %v1375_v13 = vmul.f32 0.01, %v1031_v8  ;;  %v1034_v14 = vadd.f32 %v3302_v17, %v2686_v12  ;;  %v1025_v15 = vpop.f32.mrb[99].mxu0  ;;  %2823 = vmatprep.mubr.bf16.mxu1 %v1579_v10  ;;  %vm1247_vm0 = vcmp.gt.f32.partialorder %v1031_v8, 0.0  ;;  %v3335_v10 = vld [vmem:[%s3869_s4] ss:$0 sm:$0xff] }
 0x1b9   :  { %v1373_v16 = vmul.f32 0.01, %v1023_v11  ;;  %v1026_v18 = vadd.f32 %v3302_v17, %v1025_v15  ;;  %2824 = vmatmul.mubr.bf16.gmra.mrb[92].mxu1 %v1580_v6  ;;  %vm1245_vm1 = vcmp.gt.f32.partialorder %v1023_v11, 0.0 }
 0x1ba   :  { %vm1248_vm2 = vcmp.gt.f32.partialorder %v1034_v14, 0.0  ;;  %v1376_v7 = vmul.f32 0.01, %v1034_v14  ;;  %v1503_v20 = vsel %vm1247_vm0, %v1031_v8, %v1375_v13 }
 0x1bb   :  { %vm1246_vm3 = vcmp.gt.f32.partialorder %v1026_v18, 0.0  ;;  %v1374_v19 = vmul.f32 0.01, %v1026_v18  ;;  %v1501_v23 = vsel %vm1245_vm1, %v1023_v11, %v1373_v16 }
 0x1bc   :  { %v1504_v21 = vsel %vm1248_vm2, %v1034_v14, %v1376_v7 }
 0x1bd   :  { %v2689_v22 = vpop.f32.mrb[100].mxu0  ;;  %v1502_v24 = vsel %vm1246_vm3, %v1026_v18, %v1374_v19  ;;  %v1582_v25 = vpack.c.bf16 %v1504_v21, %v1503_v20 }
 0x1be   :  { %v1047_v26 = vadd.f32 %v3302_v17, %v2689_v22  ;;  %v1038_v27 = vpop.f32.mrb[101].mxu0  ;;  %v1581_v28 = vpack.c.bf16 %v1502_v24, %v1501_v23 }
 0x1bf   :  { %v1039_v29 = vadd.f32 %v3302_v17, %v1038_v27  ;;  %v2690_v30 = vpop.f32.mrb[102].mxu0 }
 0x1c0   :  { %v1379_v31 = vmul.f32 0.01, %v1047_v26  ;;  %v1050_v32 = vadd.f32 %v3302_v17, %v2690_v30  ;;  %v1041_v33 = vpop.f32.mrb[103].mxu0  ;;  %2827 = vmatprep.mubr.bf16.mxu1 %v1581_v28  ;;  %vm1251_vm4 = vcmp.gt.f32.partialorder %v1047_v26, 0.0 }
 0x1c1   :  { %v1377_v34 = vmul.f32 0.01, %v1039_v29  ;;  %v1042_v35 = vadd.f32 %v3302_v17, %v1041_v33  ;;  %2828 = vmatmul.mubr.bf16.gmra.mrb[96].mxu1 %v1582_v25  ;;  %vm1249_vm5 = vcmp.gt.f32.partialorder %v1039_v29, 0.0 }
 0x1c2   :  { %vm1252_vm6 = vcmp.gt.f32.partialorder %v1050_v32, 0.0  ;;  %v1380_v36 = vmul.f32 0.01, %v1050_v32  ;;  %v1507_v38 = vsel %vm1251_vm4, %v1047_v26, %v1379_v31 }
 0x1c3   :  { %vm1250_vm7 = vcmp.gt.f32.partialorder %v1042_v35, 0.0  ;;  %v1378_v37 = vmul.f32 0.01, %v1042_v35  ;;  %v1505_v41 = vsel %vm1249_vm5, %v1039_v29, %v1377_v34 }
 0x1c4   :  { %v1508_v39 = vsel %vm1252_vm6, %v1050_v32, %v1380_v36 }
 0x1c5   :  { %v2693_v40 = vpop.f32.mrb[104].mxu0  ;;  %v1506_v42 = vsel %vm1250_vm7, %v1042_v35, %v1378_v37  ;;  %v1584_v43 = vpack.c.bf16 %v1508_v39, %v1507_v38 }
 0x1c6   :  { %v1063_v44 = vadd.f32 %v3302_v17, %v2693_v40  ;;  %v1054_v45 = vpop.f32.mrb[105].mxu0  ;;  %v1583_v46 = vpack.c.bf16 %v1506_v42, %v1505_v41 }
 0x1c7   :  { %v1055_v47 = vadd.f32 %v3302_v17, %v1054_v45  ;;  %v2694_v48 = vpop.f32.mrb[106].mxu0 }
 0x1c8   :  { %v1383_v49 = vmul.f32 0.01, %v1063_v44  ;;  %v1066_v50 = vadd.f32 %v3302_v17, %v2694_v48  ;;  %v1057_v51 = vpop.f32.mrb[107].mxu0  ;;  %2831 = vmatprep.mubr.bf16.mxu1 %v1583_v46  ;;  %vm1255_vm8 = vcmp.gt.f32.partialorder %v1063_v44, 0.0 }
 0x1c9   :  { %v1381_v52 = vmul.f32 0.01, %v1055_v47  ;;  %v1058_v53 = vadd.f32 %v3302_v17, %v1057_v51  ;;  %2832 = vmatmul.mubr.bf16.gmra.mrb[100].mxu1 %v1584_v43  ;;  %vm1253_vm9 = vcmp.gt.f32.partialorder %v1055_v47, 0.0 }
 0x1ca   :  { %vm1256_vm10 = vcmp.gt.f32.partialorder %v1066_v50, 0.0  ;;  %v1384_v54 = vmul.f32 0.01, %v1066_v50  ;;  %v1511_v56 = vsel %vm1255_vm8, %v1063_v44, %v1383_v49 }
 0x1cb   :  { %vm1254_vm11 = vcmp.gt.f32.partialorder %v1058_v53, 0.0  ;;  %v1382_v55 = vmul.f32 0.01, %v1058_v53  ;;  %v1509_v59 = vsel %vm1253_vm9, %v1055_v47, %v1381_v52 }
 0x1cc   :  { %v1512_v57 = vsel %vm1256_vm10, %v1066_v50, %v1384_v54 }
 0x1cd   :  { %v2697_v58 = vpop.f32.mrb[108].mxu0  ;;  %v1510_v60 = vsel %vm1254_vm11, %v1058_v53, %v1382_v55  ;;  %v1586_v61 = vpack.c.bf16 %v1512_v57, %v1511_v56 }
 0x1ce   :  { %v1079_v62 = vadd.f32 %v3302_v17, %v2697_v58  ;;  %v1070_v63 = vpop.f32.mrb[109].mxu0  ;;  %v1585_v0 = vpack.c.bf16 %v1510_v60, %v1509_v59 }
 0x1cf   :  { %v1071_v1 = vadd.f32 %v3302_v17, %v1070_v63  ;;  %v2698_v2 = vpop.f32.mrb[110].mxu0 }
 0x1d0   :  { %v1387_v3 = vmul.f32 0.01, %v1079_v62  ;;  %v1082_v4 = vadd.f32 %v3302_v17, %v2698_v2  ;;  %v1073_v5 = vpop.f32.mrb[111].mxu0  ;;  %2835 = vmatprep.mubr.bf16.mxu1 %v1585_v0  ;;  %vm1259_vm12 = vcmp.gt.f32.partialorder %v1079_v62, 0.0 }
 0x1d1   :  { %v1385_v6 = vmul.f32 0.01, %v1071_v1  ;;  %v1074_v8 = vadd.f32 %v3302_v17, %v1073_v5  ;;  %2836 = vmatmul.mubr.bf16.gmra.mrb[104].mxu1 %v1586_v61  ;;  %vm1257_vm13 = vcmp.gt.f32.partialorder %v1071_v1, 0.0 }
 0x1d2   :  { %vm1260_vm14 = vcmp.gt.f32.partialorder %v1082_v4, 0.0  ;;  %v1388_v9 = vmul.f32 0.01, %v1082_v4  ;;  %v1515_v13 = vsel %vm1259_vm12, %v1079_v62, %v1387_v3 }
 0x1d3   :  { %vm1258_vm15 = vcmp.gt.f32.partialorder %v1074_v8, 0.0  ;;  %v1386_v11 = vmul.f32 0.01, %v1074_v8  ;;  %v1513_v7 = vsel %vm1257_vm13, %v1071_v1, %v1385_v6 }
 0x1d4   :  { %v2733_v12 = vpop.f32.mrb[0].mxu1  ;;  %v1516_v14 = vsel %vm1260_vm14, %v1082_v4, %v1388_v9 }
 0x1d5   :  { %v1711_v15 = vadd.f32 %v2733_v12, %v3335_v10  ;;  %v2701_v16 = vpop.f32.mrb[112].mxu0  ;;  %v1702_v18 = vpop.f32.mrb[1].mxu1  ;;  %v1514_v19 = vsel %vm1258_vm15, %v1074_v8, %v1386_v11  ;;  %v1588_v20 = vpack.c.bf16 %v1516_v14, %v1515_v13 }
 0x1d6   :  { %v1095_v21 = vadd.f32 %v3302_v17, %v2701_v16  ;;  %v1703_v22 = vadd.f32 %v3335_v10, %v1702_v18  ;;  %v1086_v23 = vpop.f32.mrb[113].mxu0  ;;  %v2734_v24 = vpop.f32.mrb[2].mxu1  ;;  %v1587_v25 = vpack.c.bf16 %v1514_v19, %v1513_v7 }
 0x1d7   :  { %2215 = vst [vmem:[%s3870_s5 + $0x10] sm:$0xff] %v1711_v15  ;;  %v1087_v26 = vadd.f32 %v3302_v17, %v1086_v23  ;;  %v1714_v27 = vadd.f32 %v2734_v24, %v3335_v10  ;;  %v2702_v28 = vpop.f32.mrb[114].mxu0  ;;  %v1705_v29 = vpop.f32.mrb[3].mxu1 }
 0x1d8   :  { %v1391_v30 = vmul.f32 0.01, %v1095_v21  ;;  %2213 = vst [vmem:[%s3870_s5] sm:$0xff] %v1703_v22  ;;  %v1098_v31 = vadd.f32 %v3302_v17, %v2702_v28  ;;  %v1706_v32 = vadd.f32 %v3335_v10, %v1705_v29  ;;  %v1089_v33 = vpop.f32.mrb[115].mxu0  ;;  %2839 = vmatprep.mubr.bf16.mxu1 %v1587_v25  ;;  %vm1263_vm0 = vcmp.gt.f32.partialorder %v1095_v21, 0.0 }
 0x1d9   :  { %v1389_v34 = vmul.f32 0.01, %v1087_v26  ;;  %2216 = vst [vmem:[%s3870_s5 + $0x18] sm:$0xff] %v1714_v27  ;;  %v1090_v35 = vadd.f32 %v3302_v17, %v1089_v33  ;;  %2840 = vmatmul.mubr.bf16.gmra.mrb[108].mxu1 %v1588_v20  ;;  %vm1261_vm1 = vcmp.gt.f32.partialorder %v1087_v26, 0.0 }
 0x1da   :  { %vm1264_vm2 = vcmp.gt.f32.partialorder %v1098_v31, 0.0  ;;  %v1392_v36 = vmul.f32 0.01, %v1098_v31  ;;  %2214 = vst [vmem:[%s3870_s5 + $0x8] sm:$0xff] %v1706_v32  ;;  %v1519_v39 = vsel %vm1263_vm0, %v1095_v21, %v1391_v30 }
 0x1db   :  { %vm1262_vm3 = vcmp.gt.f32.partialorder %v1090_v35, 0.0  ;;  %v1390_v37 = vmul.f32 0.01, %v1090_v35  ;;  %v1517_v44 = vsel %vm1261_vm1, %v1087_v26, %v1389_v34 }
 0x1dc   :  { %v2737_v38 = vpop.f32.mrb[4].mxu1  ;;  %v1520_v40 = vsel %vm1264_vm2, %v1098_v31, %v1392_v36 }
 0x1dd   :  { %v1727_v41 = vadd.f32 %v2737_v38, %v3335_v10  ;;  %v2705_v42 = vpop.f32.mrb[116].mxu0  ;;  %v1718_v43 = vpop.f32.mrb[5].mxu1  ;;  %v1518_v45 = vsel %vm1262_vm3, %v1090_v35, %v1390_v37  ;;  %v1590_v46 = vpack.c.bf16 %v1520_v40, %v1519_v39 }
 0x1de   :  { %v1111_v47 = vadd.f32 %v3302_v17, %v2705_v42  ;;  %v1719_v48 = vadd.f32 %v3335_v10, %v1718_v43  ;;  %v1102_v49 = vpop.f32.mrb[117].mxu0  ;;  %v2738_v50 = vpop.f32.mrb[6].mxu1  ;;  %v1589_v51 = vpack.c.bf16 %v1518_v45, %v1517_v44 }
 0x1df   :  { %2219 = vst [vmem:[%s3870_s5 + $0x30] sm:$0xff] %v1727_v41  ;;  %v1103_v52 = vadd.f32 %v3302_v17, %v1102_v49  ;;  %v1730_v53 = vadd.f32 %v2738_v50, %v3335_v10  ;;  %v2706_v54 = vpop.f32.mrb[118].mxu0  ;;  %v1721_v55 = vpop.f32.mrb[7].mxu1 }
 0x1e0   :  { %v1395_v56 = vmul.f32 0.01, %v1111_v47  ;;  %2217 = vst [vmem:[%s3870_s5 + $0x20] sm:$0xff] %v1719_v48  ;;  %v1114_v57 = vadd.f32 %v3302_v17, %v2706_v54  ;;  %v1722_v58 = vadd.f32 %v3335_v10, %v1721_v55  ;;  %v1105_v59 = vpop.f32.mrb[119].mxu0  ;;  %2843 = vmatprep.mubr.bf16.mxu1 %v1589_v51  ;;  %vm1267_vm4 = vcmp.gt.f32.partialorder %v1111_v47, 0.0 }
 0x1e1   :  { %v1393_v60 = vmul.f32 0.01, %v1103_v52  ;;  %2220 = vst [vmem:[%s3870_s5 + $0x38] sm:$0xff] %v1730_v53  ;;  %v1106_v61 = vadd.f32 %v3302_v17, %v1105_v59  ;;  %2844 = vmatmul.mubr.bf16.gmra.mrb[112].mxu1 %v1590_v46  ;;  %vm1265_vm5 = vcmp.gt.f32.partialorder %v1103_v52, 0.0 }
 0x1e2   :  { %vm1268_vm6 = vcmp.gt.f32.partialorder %v1114_v57, 0.0  ;;  %v1396_v62 = vmul.f32 0.01, %v1114_v57  ;;  %2218 = vst [vmem:[%s3870_s5 + $0x28] sm:$0xff] %v1722_v58  ;;  %v1523_v1 = vsel %vm1267_vm4, %v1111_v47, %v1395_v56 }
 0x1e3   :  { %vm1266_vm7 = vcmp.gt.f32.partialorder %v1106_v61, 0.0  ;;  %v1394_v63 = vmul.f32 0.01, %v1106_v61  ;;  %v1521_v6 = vsel %vm1265_vm5, %v1103_v52, %v1393_v60 }
 0x1e4   :  { %v2741_v0 = vpop.f32.mrb[8].mxu1  ;;  %v1524_v2 = vsel %vm1268_vm6, %v1114_v57, %v1396_v62 }
 0x1e5   :  { %v1743_v3 = vadd.f32 %v2741_v0, %v3335_v10  ;;  %v2709_v4 = vpop.f32.mrb[120].mxu0  ;;  %v1734_v5 = vpop.f32.mrb[9].mxu1  ;;  %v1522_v8 = vsel %vm1266_vm7, %v1106_v61, %v1394_v63  ;;  %v1592_v9 = vpack.c.bf16 %v1524_v2, %v1523_v1 }
 0x1e6   :  { %v1127_v11 = vadd.f32 %v3302_v17, %v2709_v4  ;;  %v1735_v12 = vadd.f32 %v3335_v10, %v1734_v5  ;;  %v1118_v13 = vpop.f32.mrb[121].mxu0  ;;  %v2742_v14 = vpop.f32.mrb[10].mxu1  ;;  %v1591_v15 = vpack.c.bf16 %v1522_v8, %v1521_v6 }
 0x1e7   :  { %2223 = vst [vmem:[%s3870_s5 + $0x50] sm:$0xff] %v1743_v3  ;;  %v1119_v16 = vadd.f32 %v3302_v17, %v1118_v13  ;;  %v1746_v18 = vadd.f32 %v2742_v14, %v3335_v10  ;;  %v2710_v7 = vpop.f32.mrb[122].mxu0  ;;  %v1737_v19 = vpop.f32.mrb[11].mxu1 }
 0x1e8   :  { %v1399_v20 = vmul.f32 0.01, %v1127_v11  ;;  %2221 = vst [vmem:[%s3870_s5 + $0x40] sm:$0xff] %v1735_v12  ;;  %v1130_v21 = vadd.f32 %v3302_v17, %v2710_v7  ;;  %v1738_v22 = vadd.f32 %v3335_v10, %v1737_v19  ;;  %v1121_v23 = vpop.f32.mrb[123].mxu0  ;;  %2847 = vmatprep.mubr.bf16.mxu1 %v1591_v15  ;;  %vm1271_vm8 = vcmp.gt.f32.partialorder %v1127_v11, 0.0 }
 0x1e9   :  { %v1397_v24 = vmul.f32 0.01, %v1119_v16  ;;  %2224 = vst [vmem:[%s3870_s5 + $0x58] sm:$0xff] %v1746_v18  ;;  %v1122_v25 = vadd.f32 %v3302_v17, %v1121_v23  ;;  %2848 = vmatmul.mubr.bf16.gmra.mrb[116].mxu1 %v1592_v9  ;;  %vm1269_vm9 = vcmp.gt.f32.partialorder %v1119_v16, 0.0 }
 0x1ea   :  { %vm1272_vm10 = vcmp.gt.f32.partialorder %v1130_v21, 0.0  ;;  %v1400_v26 = vmul.f32 0.01, %v1130_v21  ;;  %2222 = vst [vmem:[%s3870_s5 + $0x48] sm:$0xff] %v1738_v22  ;;  %v1527_v29 = vsel %vm1271_vm8, %v1127_v11, %v1399_v20 }
 0x1eb   :  { %vm1270_vm11 = vcmp.gt.f32.partialorder %v1122_v25, 0.0  ;;  %v1398_v27 = vmul.f32 0.01, %v1122_v25  ;;  %v1525_v34 = vsel %vm1269_vm9, %v1119_v16, %v1397_v24 }
 0x1ec   :  { %v2745_v28 = vpop.f32.mrb[12].mxu1  ;;  %v1528_v30 = vsel %vm1272_vm10, %v1130_v21, %v1400_v26 }
 0x1ed   :  { %v1759_v31 = vadd.f32 %v2745_v28, %v3335_v10  ;;  %v2713_v32 = vpop.f32.mrb[124].mxu0  ;;  %v1750_v33 = vpop.f32.mrb[13].mxu1  ;;  %v1526_v35 = vsel %vm1270_vm11, %v1122_v25, %v1398_v27  ;;  %v1594_v36 = vpack.c.bf16 %v1528_v30, %v1527_v29 }
 0x1ee   :  { %v1143_v37 = vadd.f32 %v3302_v17, %v2713_v32  ;;  %v1751_v38 = vadd.f32 %v3335_v10, %v1750_v33  ;;  %v1134_v39 = vpop.f32.mrb[125].mxu0  ;;  %v2746_v40 = vpop.f32.mrb[14].mxu1  ;;  %v1593_v41 = vpack.c.bf16 %v1526_v35, %v1525_v34 }
 0x1ef   :  { %2227 = vst [vmem:[%s3870_s5 + $0x70] sm:$0xff] %v1759_v31  ;;  %v1135_v42 = vadd.f32 %v3302_v17, %v1134_v39  ;;  %v1762_v43 = vadd.f32 %v2746_v40, %v3335_v10  ;;  %v2714_v44 = vpop.f32.mrb[126].mxu0  ;;  %v1753_v45 = vpop.f32.mrb[15].mxu1 }
 0x1f0   :  { %v1403_v46 = vmul.f32 0.01, %v1143_v37  ;;  %2225 = vst [vmem:[%s3870_s5 + $0x60] sm:$0xff] %v1751_v38  ;;  %v1146_v47 = vadd.f32 %v3302_v17, %v2714_v44  ;;  %v1754_v48 = vadd.f32 %v3335_v10, %v1753_v45  ;;  %v1137_v49 = vpop.f32.mrb[127].mxu0  ;;  %2851 = vmatprep.mubr.bf16.mxu1 %v1593_v41  ;;  %vm1275_vm12 = vcmp.gt.f32.partialorder %v1143_v37, 0.0 }
 0x1f1   :  { %v1401_v50 = vmul.f32 0.01, %v1135_v42  ;;  %2228 = vst [vmem:[%s3870_s5 + $0x78] sm:$0xff] %v1762_v43  ;;  %v1138_v51 = vadd.f32 %v3302_v17, %v1137_v49  ;;  %2852 = vmatmul.mubr.bf16.gmra.mrb[120].mxu1 %v1594_v36  ;;  %vm1273_vm13 = vcmp.gt.f32.partialorder %v1135_v42, 0.0 }
 0x1f2   :  { %vm1276_vm14 = vcmp.gt.f32.partialorder %v1146_v47, 0.0  ;;  %v1404_v52 = vmul.f32 0.01, %v1146_v47  ;;  %2226 = vst [vmem:[%s3870_s5 + $0x68] sm:$0xff] %v1754_v48  ;;  %v1531_v55 = vsel %vm1275_vm12, %v1143_v37, %v1403_v46 }
 0x1f3   :  { %vm1274_vm15 = vcmp.gt.f32.partialorder %v1138_v51, 0.0  ;;  %v1402_v53 = vmul.f32 0.01, %v1138_v51  ;;  %v1529_v59 = vsel %vm1273_vm13, %v1135_v42, %v1401_v50 }
 0x1f4   :  { %v2749_v54 = vpop.f32.mrb[16].mxu1  ;;  %v1532_v56 = vsel %vm1276_vm14, %v1146_v47, %v1404_v52 }
 0x1f5   :  { %v1775_v57 = vadd.f32 %v2749_v54, %v3335_v10  ;;  %v1766_v58 = vpop.f32.mrb[17].mxu1  ;;  %v1530_v60 = vsel %vm1274_vm15, %v1138_v51, %v1402_v53  ;;  %v1596_v61 = vpack.c.bf16 %v1532_v56, %v1531_v55 }
 0x1f6   :  { %v1767_v17 = vadd.f32 %v3335_v10, %v1766_v58  ;;  %v2750_v62 = vpop.f32.mrb[18].mxu1  ;;  %v1595_v63 = vpack.c.bf16 %v1530_v60, %v1529_v59 }
 0x1f7   :  { %2231 = vst [vmem:[%s3870_s5 + $0x90] sm:$0xff] %v1775_v57  ;;  %v1778_v0 = vadd.f32 %v2750_v62, %v3335_v10  ;;  %v1769_v1 = vpop.f32.mrb[19].mxu1 }
 0x1f8   :  { %2229 = vst [vmem:[%s3870_s5 + $0x80] sm:$0xff] %v1767_v17  ;;  %v1770_v2 = vadd.f32 %v3335_v10, %v1769_v1  ;;  %2855 = vmatprep.mubr.bf16.mxu1 %v1595_v63 }
 0x1f9   :  { %2232 = vst [vmem:[%s3870_s5 + $0x98] sm:$0xff] %v1778_v0  ;;  %2856 = vmatmul.mubr.bf16.gmra.mrb[124].mxu1 %v1596_v61 }
 0x1fa   :  { %2230 = vst [vmem:[%s3870_s5 + $0x88] sm:$0xff] %v1770_v2 }
 0x1fc   :  { %v2753_v3 = vpop.f32.mrb[20].mxu1 }
 0x1fd   :  { %v1791_v4 = vadd.f32 %v2753_v3, %v3335_v10  ;;  %v1782_v5 = vpop.f32.mrb[21].mxu1 }
 0x1fe   :  { %v1783_v6 = vadd.f32 %v3335_v10, %v1782_v5  ;;  %v2754_v8 = vpop.f32.mrb[22].mxu1 }
 0x1ff   :  { %2235 = vst [vmem:[%s3870_s5 + $0xb0] sm:$0xff] %v1791_v4  ;;  %v1794_v9 = vadd.f32 %v2754_v8, %v3335_v10  ;;  %v1785_v11 = vpop.f32.mrb[23].mxu1 }
 0x200   :  { %2233 = vst [vmem:[%s3870_s5 + $0xa0] sm:$0xff] %v1783_v6  ;;  %v1786_v12 = vadd.f32 %v3335_v10, %v1785_v11 }
 0x201   :  { %2236 = vst [vmem:[%s3870_s5 + $0xb8] sm:$0xff] %v1794_v9 }
 0x202   :  { %2234 = vst [vmem:[%s3870_s5 + $0xa8] sm:$0xff] %v1786_v12 }
 0x204   :  { %v2757_v13 = vpop.f32.mrb[24].mxu1 }
 0x205   :  { %v1807_v14 = vadd.f32 %v2757_v13, %v3335_v10  ;;  %v1798_v15 = vpop.f32.mrb[25].mxu1 }
 0x206   :  { %v1799_v16 = vadd.f32 %v3335_v10, %v1798_v15  ;;  %v2758_v18 = vpop.f32.mrb[26].mxu1 }
 0x207   :  { %2239 = vst [vmem:[%s3870_s5 + $0xd0] sm:$0xff] %v1807_v14  ;;  %v1810_v7 = vadd.f32 %v2758_v18, %v3335_v10  ;;  %v1801_v19 = vpop.f32.mrb[27].mxu1 }
 0x208   :  { %2237 = vst [vmem:[%s3870_s5 + $0xc0] sm:$0xff] %v1799_v16  ;;  %v1802_v20 = vadd.f32 %v3335_v10, %v1801_v19 }
 0x209   :  { %2240 = vst [vmem:[%s3870_s5 + $0xd8] sm:$0xff] %v1810_v7 }
 0x20a   :  { %2238 = vst [vmem:[%s3870_s5 + $0xc8] sm:$0xff] %v1802_v20 }
 0x20c   :  { %v2761_v21 = vpop.f32.mrb[28].mxu1 }
 0x20d   :  { %v1823_v22 = vadd.f32 %v2761_v21, %v3335_v10  ;;  %v1814_v23 = vpop.f32.mrb[29].mxu1 }
 0x20e   :  { %v1815_v24 = vadd.f32 %v3335_v10, %v1814_v23  ;;  %v2762_v25 = vpop.f32.mrb[30].mxu1 }
 0x20f   :  { %2243 = vst [vmem:[%s3870_s5 + $0xf0] sm:$0xff] %v1823_v22  ;;  %v1826_v26 = vadd.f32 %v2762_v25, %v3335_v10  ;;  %v1817_v27 = vpop.f32.mrb[31].mxu1 }
 0x210   :  { %2241 = vst [vmem:[%s3870_s5 + $0xe0] sm:$0xff] %v1815_v24  ;;  %v1818_v28 = vadd.f32 %v3335_v10, %v1817_v27 }
 0x211   :  { %2244 = vst [vmem:[%s3870_s5 + $0xf8] sm:$0xff] %v1826_v26 }
 0x212   :  { %2242 = vst [vmem:[%s3870_s5 + $0xe8] sm:$0xff] %v1818_v28 }
 0x214   :  { %v2765_v29 = vpop.f32.mrb[32].mxu1 }
 0x215   :  { %v1839_v30 = vadd.f32 %v2765_v29, %v3335_v10  ;;  %v1830_v31 = vpop.f32.mrb[33].mxu1 }
 0x216   :  { %v1831_v32 = vadd.f32 %v3335_v10, %v1830_v31  ;;  %v2766_v33 = vpop.f32.mrb[34].mxu1 }
 0x217   :  { %2247 = vst [vmem:[%s3870_s5 + $0x110] sm:$0xff] %v1839_v30  ;;  %v1842_v34 = vadd.f32 %v2766_v33, %v3335_v10  ;;  %v1833_v35 = vpop.f32.mrb[35].mxu1 }
 0x218   :  { %2245 = vst [vmem:[%s3870_s5 + $0x100] sm:$0xff] %v1831_v32  ;;  %v1834_v36 = vadd.f32 %v3335_v10, %v1833_v35 }
 0x219   :  { %2248 = vst [vmem:[%s3870_s5 + $0x118] sm:$0xff] %v1842_v34 }
 0x21a   :  { %2246 = vst [vmem:[%s3870_s5 + $0x108] sm:$0xff] %v1834_v36 }
 0x21c   :  { %v2769_v37 = vpop.f32.mrb[36].mxu1 }
 0x21d   :  { %v1855_v38 = vadd.f32 %v2769_v37, %v3335_v10  ;;  %v1846_v39 = vpop.f32.mrb[37].mxu1 }
 0x21e   :  { %v1847_v40 = vadd.f32 %v3335_v10, %v1846_v39  ;;  %v2770_v41 = vpop.f32.mrb[38].mxu1 }
 0x21f   :  { %2251 = vst [vmem:[%s3870_s5 + $0x130] sm:$0xff] %v1855_v38  ;;  %v1858_v42 = vadd.f32 %v2770_v41, %v3335_v10  ;;  %v1849_v43 = vpop.f32.mrb[39].mxu1 }
 0x220   :  { %2249 = vst [vmem:[%s3870_s5 + $0x120] sm:$0xff] %v1847_v40  ;;  %v1850_v44 = vadd.f32 %v3335_v10, %v1849_v43 }
 0x221   :  { %2252 = vst [vmem:[%s3870_s5 + $0x138] sm:$0xff] %v1858_v42 }
 0x222   :  { %2250 = vst [vmem:[%s3870_s5 + $0x128] sm:$0xff] %v1850_v44 }
 0x224   :  { %v2773_v45 = vpop.f32.mrb[40].mxu1 }
 0x225   :  { %v1871_v46 = vadd.f32 %v2773_v45, %v3335_v10  ;;  %v1862_v47 = vpop.f32.mrb[41].mxu1 }
 0x226   :  { %v1863_v48 = vadd.f32 %v3335_v10, %v1862_v47  ;;  %v2774_v49 = vpop.f32.mrb[42].mxu1 }
 0x227   :  { %2255 = vst [vmem:[%s3870_s5 + $0x150] sm:$0xff] %v1871_v46  ;;  %v1874_v50 = vadd.f32 %v2774_v49, %v3335_v10  ;;  %v1865_v51 = vpop.f32.mrb[43].mxu1 }
 0x228   :  { %2253 = vst [vmem:[%s3870_s5 + $0x140] sm:$0xff] %v1863_v48  ;;  %v1866_v52 = vadd.f32 %v3335_v10, %v1865_v51 }
 0x229   :  { %2256 = vst [vmem:[%s3870_s5 + $0x158] sm:$0xff] %v1874_v50 }
 0x22a   :  { %2254 = vst [vmem:[%s3870_s5 + $0x148] sm:$0xff] %v1866_v52 }
 0x22c   :  { %v2777_v53 = vpop.f32.mrb[44].mxu1 }
 0x22d   :  { %v1887_v54 = vadd.f32 %v2777_v53, %v3335_v10  ;;  %v1878_v55 = vpop.f32.mrb[45].mxu1 }
 0x22e   :  { %v1879_v56 = vadd.f32 %v3335_v10, %v1878_v55  ;;  %v2778_v57 = vpop.f32.mrb[46].mxu1 }
 0x22f   :  { %2259 = vst [vmem:[%s3870_s5 + $0x170] sm:$0xff] %v1887_v54  ;;  %v1890_v58 = vadd.f32 %v2778_v57, %v3335_v10  ;;  %v1881_v59 = vpop.f32.mrb[47].mxu1 }
 0x230   :  { %2257 = vst [vmem:[%s3870_s5 + $0x160] sm:$0xff] %v1879_v56  ;;  %v1882_v60 = vadd.f32 %v3335_v10, %v1881_v59 }
 0x231   :  { %2260 = vst [vmem:[%s3870_s5 + $0x178] sm:$0xff] %v1890_v58 }
 0x232   :  { %2258 = vst [vmem:[%s3870_s5 + $0x168] sm:$0xff] %v1882_v60 }
 0x234   :  { %v2781_v61 = vpop.f32.mrb[48].mxu1 }
 0x235   :  { %v1903_v17 = vadd.f32 %v2781_v61, %v3335_v10  ;;  %v1894_v62 = vpop.f32.mrb[49].mxu1 }
 0x236   :  { %v1895_v63 = vadd.f32 %v3335_v10, %v1894_v62  ;;  %v2782_v0 = vpop.f32.mrb[50].mxu1 }
 0x237   :  { %2263 = vst [vmem:[%s3870_s5 + $0x190] sm:$0xff] %v1903_v17  ;;  %v1906_v1 = vadd.f32 %v2782_v0, %v3335_v10  ;;  %v1897_v2 = vpop.f32.mrb[51].mxu1 }
 0x238   :  { %2261 = vst [vmem:[%s3870_s5 + $0x180] sm:$0xff] %v1895_v63  ;;  %v1898_v3 = vadd.f32 %v3335_v10, %v1897_v2 }
 0x239   :  { %2264 = vst [vmem:[%s3870_s5 + $0x198] sm:$0xff] %v1906_v1 }
 0x23a   :  { %2262 = vst [vmem:[%s3870_s5 + $0x188] sm:$0xff] %v1898_v3 }
 0x23c   :  { %v2785_v4 = vpop.f32.mrb[52].mxu1 }
 0x23d   :  { %v1919_v5 = vadd.f32 %v2785_v4, %v3335_v10  ;;  %v1910_v6 = vpop.f32.mrb[53].mxu1 }
 0x23e   :  { %v1911_v8 = vadd.f32 %v3335_v10, %v1910_v6  ;;  %v2786_v9 = vpop.f32.mrb[54].mxu1 }
 0x23f   :  { %2267 = vst [vmem:[%s3870_s5 + $0x1b0] sm:$0xff] %v1919_v5  ;;  %v1922_v11 = vadd.f32 %v2786_v9, %v3335_v10  ;;  %v1913_v12 = vpop.f32.mrb[55].mxu1 }
 0x240   :  { %2265 = vst [vmem:[%s3870_s5 + $0x1a0] sm:$0xff] %v1911_v8  ;;  %v1914_v13 = vadd.f32 %v3335_v10, %v1913_v12 }
 0x241   :  { %2268 = vst [vmem:[%s3870_s5 + $0x1b8] sm:$0xff] %v1922_v11 }
 0x242   :  { %2266 = vst [vmem:[%s3870_s5 + $0x1a8] sm:$0xff] %v1914_v13 }
 0x244   :  { %v2789_v14 = vpop.f32.mrb[56].mxu1 }
 0x245   :  { %v1935_v15 = vadd.f32 %v2789_v14, %v3335_v10  ;;  %v1926_v16 = vpop.f32.mrb[57].mxu1 }
 0x246   :  { %v1927_v18 = vadd.f32 %v3335_v10, %v1926_v16  ;;  %v2790_v7 = vpop.f32.mrb[58].mxu1 }
 0x247   :  { %2271 = vst [vmem:[%s3870_s5 + $0x1d0] sm:$0xff] %v1935_v15  ;;  %v1938_v19 = vadd.f32 %v2790_v7, %v3335_v10  ;;  %v1929_v20 = vpop.f32.mrb[59].mxu1 }
 0x248   :  { %2269 = vst [vmem:[%s3870_s5 + $0x1c0] sm:$0xff] %v1927_v18  ;;  %v1930_v21 = vadd.f32 %v3335_v10, %v1929_v20 }
 0x249   :  { %2272 = vst [vmem:[%s3870_s5 + $0x1d8] sm:$0xff] %v1938_v19 }
 0x24a   :  { %2270 = vst [vmem:[%s3870_s5 + $0x1c8] sm:$0xff] %v1930_v21 }
 0x24c   :  { %v2793_v22 = vpop.f32.mrb[60].mxu1 }
 0x24d   :  { %v1951_v23 = vadd.f32 %v2793_v22, %v3335_v10  ;;  %v1942_v24 = vpop.f32.mrb[61].mxu1 }
 0x24e   :  { %v1943_v25 = vadd.f32 %v3335_v10, %v1942_v24  ;;  %v2794_v26 = vpop.f32.mrb[62].mxu1 }
 0x24f   :  { %2275 = vst [vmem:[%s3870_s5 + $0x1f0] sm:$0xff] %v1951_v23  ;;  %v1954_v27 = vadd.f32 %v2794_v26, %v3335_v10  ;;  %v1945_v28 = vpop.f32.mrb[63].mxu1 }
 0x250   :  { %2273 = vst [vmem:[%s3870_s5 + $0x1e0] sm:$0xff] %v1943_v25  ;;  %v1946_v29 = vadd.f32 %v3335_v10, %v1945_v28 }
 0x251   :  { %2276 = vst [vmem:[%s3870_s5 + $0x1f8] sm:$0xff] %v1954_v27 }
 0x252   :  { %2274 = vst [vmem:[%s3870_s5 + $0x1e8] sm:$0xff] %v1946_v29 }
 0x254   :  { %v2797_v30 = vpop.f32.mrb[64].mxu1 }
 0x255   :  { %v1967_v31 = vadd.f32 %v2797_v30, %v3335_v10  ;;  %v1958_v32 = vpop.f32.mrb[65].mxu1 }
 0x256   :  { %v1959_v33 = vadd.f32 %v3335_v10, %v1958_v32  ;;  %v2798_v34 = vpop.f32.mrb[66].mxu1 }
 0x257   :  { %2279 = vst [vmem:[%s3870_s5 + $0x210] sm:$0xff] %v1967_v31  ;;  %v1970_v35 = vadd.f32 %v2798_v34, %v3335_v10  ;;  %v1961_v36 = vpop.f32.mrb[67].mxu1 }
 0x258   :  { %2277 = vst [vmem:[%s3870_s5 + $0x200] sm:$0xff] %v1959_v33  ;;  %v1962_v37 = vadd.f32 %v3335_v10, %v1961_v36 }
 0x259   :  { %2280 = vst [vmem:[%s3870_s5 + $0x218] sm:$0xff] %v1970_v35 }
 0x25a   :  { %2278 = vst [vmem:[%s3870_s5 + $0x208] sm:$0xff] %v1962_v37 }
 0x25c   :  { %v2801_v38 = vpop.f32.mrb[68].mxu1 }
 0x25d   :  { %v1983_v39 = vadd.f32 %v2801_v38, %v3335_v10  ;;  %v1974_v40 = vpop.f32.mrb[69].mxu1 }
 0x25e   :  { %v1975_v41 = vadd.f32 %v3335_v10, %v1974_v40  ;;  %v2802_v42 = vpop.f32.mrb[70].mxu1 }
 0x25f   :  { %2283 = vst [vmem:[%s3870_s5 + $0x230] sm:$0xff] %v1983_v39  ;;  %v1986_v43 = vadd.f32 %v2802_v42, %v3335_v10  ;;  %v1977_v44 = vpop.f32.mrb[71].mxu1 }
 0x260   :  { %2281 = vst [vmem:[%s3870_s5 + $0x220] sm:$0xff] %v1975_v41  ;;  %v1978_v45 = vadd.f32 %v3335_v10, %v1977_v44 }
 0x261   :  { %2284 = vst [vmem:[%s3870_s5 + $0x238] sm:$0xff] %v1986_v43 }
 0x262   :  { %2282 = vst [vmem:[%s3870_s5 + $0x228] sm:$0xff] %v1978_v45 }
 0x264   :  { %v2805_v46 = vpop.f32.mrb[72].mxu1 }
 0x265   :  { %v1999_v47 = vadd.f32 %v2805_v46, %v3335_v10  ;;  %v1990_v48 = vpop.f32.mrb[73].mxu1 }
 0x266   :  { %v1991_v49 = vadd.f32 %v3335_v10, %v1990_v48  ;;  %v2806_v50 = vpop.f32.mrb[74].mxu1 }
 0x267   :  { %2287 = vst [vmem:[%s3870_s5 + $0x250] sm:$0xff] %v1999_v47  ;;  %v2002_v51 = vadd.f32 %v2806_v50, %v3335_v10  ;;  %v1993_v52 = vpop.f32.mrb[75].mxu1 }
 0x268   :  { %2285 = vst [vmem:[%s3870_s5 + $0x240] sm:$0xff] %v1991_v49  ;;  %v1994_v53 = vadd.f32 %v3335_v10, %v1993_v52 }
 0x269   :  { %2288 = vst [vmem:[%s3870_s5 + $0x258] sm:$0xff] %v2002_v51 }
 0x26a   :  { %2286 = vst [vmem:[%s3870_s5 + $0x248] sm:$0xff] %v1994_v53 }
 0x26c   :  { %v2809_v54 = vpop.f32.mrb[76].mxu1 }
 0x26d   :  { %v2015_v55 = vadd.f32 %v2809_v54, %v3335_v10  ;;  %v2006_v56 = vpop.f32.mrb[77].mxu1 }
 0x26e   :  { %v2007_v57 = vadd.f32 %v3335_v10, %v2006_v56  ;;  %v2810_v58 = vpop.f32.mrb[78].mxu1 }
 0x26f   :  { %2291 = vst [vmem:[%s3870_s5 + $0x270] sm:$0xff] %v2015_v55  ;;  %v2018_v59 = vadd.f32 %v2810_v58, %v3335_v10  ;;  %v2009_v60 = vpop.f32.mrb[79].mxu1 }
 0x270   :  { %2289 = vst [vmem:[%s3870_s5 + $0x260] sm:$0xff] %v2007_v57  ;;  %v2010_v61 = vadd.f32 %v3335_v10, %v2009_v60 }
 0x271   :  { %2292 = vst [vmem:[%s3870_s5 + $0x278] sm:$0xff] %v2018_v59 }
 0x272   :  { %2290 = vst [vmem:[%s3870_s5 + $0x268] sm:$0xff] %v2010_v61 }
 0x274   :  { %v2813_v17 = vpop.f32.mrb[80].mxu1 }
 0x275   :  { %v2031_v62 = vadd.f32 %v2813_v17, %v3335_v10  ;;  %v2022_v63 = vpop.f32.mrb[81].mxu1 }
 0x276   :  { %v2023_v0 = vadd.f32 %v3335_v10, %v2022_v63  ;;  %v2814_v1 = vpop.f32.mrb[82].mxu1 }
 0x277   :  { %2295 = vst [vmem:[%s3870_s5 + $0x290] sm:$0xff] %v2031_v62  ;;  %v2034_v2 = vadd.f32 %v2814_v1, %v3335_v10  ;;  %v2025_v3 = vpop.f32.mrb[83].mxu1 }
 0x278   :  { %2293 = vst [vmem:[%s3870_s5 + $0x280] sm:$0xff] %v2023_v0  ;;  %v2026_v4 = vadd.f32 %v3335_v10, %v2025_v3 }
 0x279   :  { %2296 = vst [vmem:[%s3870_s5 + $0x298] sm:$0xff] %v2034_v2 }
 0x27a   :  { %2294 = vst [vmem:[%s3870_s5 + $0x288] sm:$0xff] %v2026_v4 }
 0x27c   :  { %v2817_v5 = vpop.f32.mrb[84].mxu1 }
 0x27d   :  { %v2047_v6 = vadd.f32 %v2817_v5, %v3335_v10  ;;  %v2038_v8 = vpop.f32.mrb[85].mxu1 }
 0x27e   :  { %v2039_v9 = vadd.f32 %v3335_v10, %v2038_v8  ;;  %v2818_v11 = vpop.f32.mrb[86].mxu1 }
 0x27f   :  { %2299 = vst [vmem:[%s3870_s5 + $0x2b0] sm:$0xff] %v2047_v6  ;;  %v2050_v12 = vadd.f32 %v2818_v11, %v3335_v10  ;;  %v2041_v13 = vpop.f32.mrb[87].mxu1 }
 0x280   :  { %2297 = vst [vmem:[%s3870_s5 + $0x2a0] sm:$0xff] %v2039_v9  ;;  %v2042_v14 = vadd.f32 %v3335_v10, %v2041_v13 }
 0x281   :  { %2300 = vst [vmem:[%s3870_s5 + $0x2b8] sm:$0xff] %v2050_v12 }
 0x282   :  { %2298 = vst [vmem:[%s3870_s5 + $0x2a8] sm:$0xff] %v2042_v14 }
 0x284   :  { %v2821_v15 = vpop.f32.mrb[88].mxu1 }
 0x285   :  { %v2063_v16 = vadd.f32 %v2821_v15, %v3335_v10  ;;  %v2054_v18 = vpop.f32.mrb[89].mxu1 }
 0x286   :  { %v2055_v7 = vadd.f32 %v3335_v10, %v2054_v18  ;;  %v2822_v19 = vpop.f32.mrb[90].mxu1 }
 0x287   :  { %2303 = vst [vmem:[%s3870_s5 + $0x2d0] sm:$0xff] %v2063_v16  ;;  %v2066_v20 = vadd.f32 %v2822_v19, %v3335_v10  ;;  %v2057_v21 = vpop.f32.mrb[91].mxu1 }
 0x288   :  { %2301 = vst [vmem:[%s3870_s5 + $0x2c0] sm:$0xff] %v2055_v7  ;;  %v2058_v22 = vadd.f32 %v3335_v10, %v2057_v21 }
 0x289   :  { %2304 = vst [vmem:[%s3870_s5 + $0x2d8] sm:$0xff] %v2066_v20 }
 0x28a   :  { %2302 = vst [vmem:[%s3870_s5 + $0x2c8] sm:$0xff] %v2058_v22 }
 0x28c   :  { %v2825_v23 = vpop.f32.mrb[92].mxu1 }
 0x28d   :  { %v2079_v24 = vadd.f32 %v2825_v23, %v3335_v10  ;;  %v2070_v25 = vpop.f32.mrb[93].mxu1 }
 0x28e   :  { %v2071_v26 = vadd.f32 %v3335_v10, %v2070_v25  ;;  %v2826_v27 = vpop.f32.mrb[94].mxu1 }
 0x28f   :  { %2307 = vst [vmem:[%s3870_s5 + $0x2f0] sm:$0xff] %v2079_v24  ;;  %v2082_v28 = vadd.f32 %v2826_v27, %v3335_v10  ;;  %v2073_v29 = vpop.f32.mrb[95].mxu1 }
 0x290   :  { %2305 = vst [vmem:[%s3870_s5 + $0x2e0] sm:$0xff] %v2071_v26  ;;  %v2074_v30 = vadd.f32 %v3335_v10, %v2073_v29 }
 0x291   :  { %2308 = vst [vmem:[%s3870_s5 + $0x2f8] sm:$0xff] %v2082_v28 }
 0x292   :  { %2306 = vst [vmem:[%s3870_s5 + $0x2e8] sm:$0xff] %v2074_v30 }
 0x294   :  { %v2829_v31 = vpop.f32.mrb[96].mxu1 }
 0x295   :  { %v2095_v32 = vadd.f32 %v2829_v31, %v3335_v10  ;;  %v2086_v33 = vpop.f32.mrb[97].mxu1 }
 0x296   :  { %v2087_v34 = vadd.f32 %v3335_v10, %v2086_v33  ;;  %v2830_v35 = vpop.f32.mrb[98].mxu1 }
 0x297   :  { %2311 = vst [vmem:[%s3870_s5 + $0x310] sm:$0xff] %v2095_v32  ;;  %v2098_v36 = vadd.f32 %v2830_v35, %v3335_v10  ;;  %v2089_v37 = vpop.f32.mrb[99].mxu1 }
 0x298   :  { %2309 = vst [vmem:[%s3870_s5 + $0x300] sm:$0xff] %v2087_v34  ;;  %v2090_v38 = vadd.f32 %v3335_v10, %v2089_v37 }
 0x299   :  { %2312 = vst [vmem:[%s3870_s5 + $0x318] sm:$0xff] %v2098_v36 }
 0x29a   :  { %2310 = vst [vmem:[%s3870_s5 + $0x308] sm:$0xff] %v2090_v38 }
 0x29c   :  { %v2833_v39 = vpop.f32.mrb[100].mxu1 }
 0x29d   :  { %v2111_v40 = vadd.f32 %v2833_v39, %v3335_v10  ;;  %v2102_v41 = vpop.f32.mrb[101].mxu1 }
 0x29e   :  { %v2103_v42 = vadd.f32 %v3335_v10, %v2102_v41  ;;  %v2834_v43 = vpop.f32.mrb[102].mxu1 }
 0x29f   :  { %2315 = vst [vmem:[%s3870_s5 + $0x330] sm:$0xff] %v2111_v40  ;;  %v2114_v44 = vadd.f32 %v2834_v43, %v3335_v10  ;;  %v2105_v45 = vpop.f32.mrb[103].mxu1 }
 0x2a0   :  { %2313 = vst [vmem:[%s3870_s5 + $0x320] sm:$0xff] %v2103_v42  ;;  %v2106_v46 = vadd.f32 %v3335_v10, %v2105_v45 }
 0x2a1   :  { %2316 = vst [vmem:[%s3870_s5 + $0x338] sm:$0xff] %v2114_v44 }
 0x2a2   :  { %2314 = vst [vmem:[%s3870_s5 + $0x328] sm:$0xff] %v2106_v46 }
 0x2a4   :  { %v2837_v47 = vpop.f32.mrb[104].mxu1 }
 0x2a5   :  { %v2127_v48 = vadd.f32 %v2837_v47, %v3335_v10  ;;  %v2118_v49 = vpop.f32.mrb[105].mxu1 }
 0x2a6   :  { %v2119_v50 = vadd.f32 %v3335_v10, %v2118_v49  ;;  %v2838_v51 = vpop.f32.mrb[106].mxu1 }
 0x2a7   :  { %2319 = vst [vmem:[%s3870_s5 + $0x350] sm:$0xff] %v2127_v48  ;;  %v2130_v52 = vadd.f32 %v2838_v51, %v3335_v10  ;;  %v2121_v53 = vpop.f32.mrb[107].mxu1 }
 0x2a8   :  { %2317 = vst [vmem:[%s3870_s5 + $0x340] sm:$0xff] %v2119_v50  ;;  %v2122_v54 = vadd.f32 %v3335_v10, %v2121_v53 }
 0x2a9   :  { %2320 = vst [vmem:[%s3870_s5 + $0x358] sm:$0xff] %v2130_v52 }
 0x2aa   :  { %2318 = vst [vmem:[%s3870_s5 + $0x348] sm:$0xff] %v2122_v54 }
 0x2ac   :  { %v2841_v55 = vpop.f32.mrb[108].mxu1 }
 0x2ad   :  { %v2143_v56 = vadd.f32 %v2841_v55, %v3335_v10  ;;  %v2134_v57 = vpop.f32.mrb[109].mxu1 }
 0x2ae   :  { %v2135_v58 = vadd.f32 %v3335_v10, %v2134_v57  ;;  %v2842_v59 = vpop.f32.mrb[110].mxu1 }
 0x2af   :  { %2323 = vst [vmem:[%s3870_s5 + $0x370] sm:$0xff] %v2143_v56  ;;  %v2146_v60 = vadd.f32 %v2842_v59, %v3335_v10  ;;  %v2137_v61 = vpop.f32.mrb[111].mxu1 }
 0x2b0   :  { %2321 = vst [vmem:[%s3870_s5 + $0x360] sm:$0xff] %v2135_v58  ;;  %v2138_v17 = vadd.f32 %v3335_v10, %v2137_v61 }
 0x2b1   :  { %2324 = vst [vmem:[%s3870_s5 + $0x378] sm:$0xff] %v2146_v60 }
 0x2b2   :  { %2322 = vst [vmem:[%s3870_s5 + $0x368] sm:$0xff] %v2138_v17 }
 0x2b4   :  { %v2845_v62 = vpop.f32.mrb[112].mxu1 }
 0x2b5   :  { %v2159_v63 = vadd.f32 %v2845_v62, %v3335_v10  ;;  %v2150_v0 = vpop.f32.mrb[113].mxu1 }
 0x2b6   :  { %v2151_v1 = vadd.f32 %v3335_v10, %v2150_v0  ;;  %v2846_v2 = vpop.f32.mrb[114].mxu1 }
 0x2b7   :  { %2327 = vst [vmem:[%s3870_s5 + $0x390] sm:$0xff] %v2159_v63  ;;  %v2162_v3 = vadd.f32 %v2846_v2, %v3335_v10  ;;  %v2153_v4 = vpop.f32.mrb[115].mxu1 }
 0x2b8   :  { %2325 = vst [vmem:[%s3870_s5 + $0x380] sm:$0xff] %v2151_v1  ;;  %v2154_v5 = vadd.f32 %v3335_v10, %v2153_v4 }
 0x2b9   :  { %2328 = vst [vmem:[%s3870_s5 + $0x398] sm:$0xff] %v2162_v3 }
 0x2ba   :  { %2326 = vst [vmem:[%s3870_s5 + $0x388] sm:$0xff] %v2154_v5 }
 0x2bc   :  { %v2849_v6 = vpop.f32.mrb[116].mxu1 }
 0x2bd   :  { %v2175_v8 = vadd.f32 %v2849_v6, %v3335_v10  ;;  %v2166_v9 = vpop.f32.mrb[117].mxu1 }
 0x2be   :  { %v2167_v11 = vadd.f32 %v3335_v10, %v2166_v9  ;;  %v2850_v12 = vpop.f32.mrb[118].mxu1 }
 0x2bf   :  { %2331 = vst [vmem:[%s3870_s5 + $0x3b0] sm:$0xff] %v2175_v8  ;;  %v2178_v13 = vadd.f32 %v2850_v12, %v3335_v10  ;;  %v2169_v14 = vpop.f32.mrb[119].mxu1 }
 0x2c0   :  { %2329 = vst [vmem:[%s3870_s5 + $0x3a0] sm:$0xff] %v2167_v11  ;;  %v2170_v15 = vadd.f32 %v3335_v10, %v2169_v14 }
 0x2c1   :  { %2332 = vst [vmem:[%s3870_s5 + $0x3b8] sm:$0xff] %v2178_v13 }
 0x2c2   :  { %2330 = vst [vmem:[%s3870_s5 + $0x3a8] sm:$0xff] %v2170_v15 }
 0x2c4   :  { %v2853_v16 = vpop.f32.mrb[120].mxu1 }
 0x2c5   :  { %v2191_v18 = vadd.f32 %v2853_v16, %v3335_v10  ;;  %v2182_v7 = vpop.f32.mrb[121].mxu1 }
 0x2c6   :  { %v2183_v19 = vadd.f32 %v3335_v10, %v2182_v7  ;;  %v2854_v20 = vpop.f32.mrb[122].mxu1 }
 0x2c7   :  { %2335 = vst [vmem:[%s3870_s5 + $0x3d0] sm:$0xff] %v2191_v18  ;;  %v2194_v21 = vadd.f32 %v2854_v20, %v3335_v10  ;;  %v2185_v22 = vpop.f32.mrb[123].mxu1 }
 0x2c8   :  { %2333 = vst [vmem:[%s3870_s5 + $0x3c0] sm:$0xff] %v2183_v19  ;;  %v2186_v23 = vadd.f32 %v3335_v10, %v2185_v22 }
 0x2c9   :  { %2336 = vst [vmem:[%s3870_s5 + $0x3d8] sm:$0xff] %v2194_v21 }
 0x2ca   :  { %2334 = vst [vmem:[%s3870_s5 + $0x3c8] sm:$0xff] %v2186_v23 }
 0x2cc   :  { %v2857_v24 = vpop.f32.mrb[124].mxu1 }
 0x2cd   :  { %v2207_v25 = vadd.f32 %v2857_v24, %v3335_v10  ;;  %v2198_v26 = vpop.f32.mrb[125].mxu1 }
 0x2ce   :  { %v2199_v27 = vadd.f32 %v3335_v10, %v2198_v26  ;;  %v2858_v28 = vpop.f32.mrb[126].mxu1 }
 0x2cf   :  { %2339 = vst [vmem:[%s3870_s5 + $0x3f0] sm:$0xff] %v2207_v25  ;;  %v2210_v29 = vadd.f32 %v2858_v28, %v3335_v10  ;;  %v2201_v30 = vpop.f32.mrb[127].mxu1 }
 0x2d0   :  { %2337 = vst [vmem:[%s3870_s5 + $0x3e0] sm:$0xff] %v2199_v27  ;;  %v2202_v31 = vadd.f32 %v3335_v10, %v2201_v30 }
 0x2d1   :  { %2340 = vst [vmem:[%s3870_s5 + $0x3f8] sm:$0xff] %v2210_v29 }
 0x2d2   :  { %2338 = vst [vmem:[%s3870_s5 + $0x3e8] sm:$0xff] %v2202_v31 }

</bundles_post_ra>
